<compile_context>
chip_gen: v7x
topology: tpu7x:2x2x1
jax: 0.10.0
libtpu: 0.0.40
codegen_flags: <defaults>
</compile_context>

<pallas_src>
import math
import functools

import jax
import jax.numpy as jnp
from jax import lax
from jax.experimental import pallas as pl
from jax.experimental.pallas import tpu as pltpu


# ------------------------------ fused kernel --------------------------------

def _fused_forward_kernel(x_ref, pe_ref, W_emb_ref, W_out_ref, b_out_ref,
                          Wcols_ref, Wff2_ref, bias_ref, out_ref,
                          *, B, S, D, H, num_layers, eps):
    """Single grid step: whole batch, whole model.

    Shapes:
      x_ref    : (B*S, input_dim)
      pe_ref   : (B*S, D)          positional encoding + embedding bias
      W_emb_ref: (input_dim, D)
      W_out_ref: (D, out_dim)      b_out_ref: (1, out_dim)
      Wcols_ref: (L, D, 8*D)       [W_qkv (3D) | W_o (D) | W_ff1 (4D)]
      Wff2_ref : (L, 4*D, D)
      bias_ref : (L, 8, 4*D)       rows: b_qkv, b_o, ln1_g, ln1_b,
                                         b_ff1, b_ff2, ln2_g, ln2_b
      out_ref  : (B, out_dim)
    """
    Dh = D // H
    R = B * S
    scale = 1.0 / math.sqrt(Dh)

    def layer_norm(y, g, b):
        mu = jnp.mean(y, axis=-1, keepdims=True)
        d = y - mu
        var = jnp.mean(d * d, axis=-1, keepdims=True)
        return d * lax.rsqrt(var + eps) * g + b

    # ---- input embedding + bias + positional encoding (dropout == identity) ----
    h = jnp.dot(x_ref[...], W_emb_ref[...], preferred_element_type=jnp.float32)
    h = h + pe_ref[...]                                           # (R, D)

    # ---- transformer encoder layers (post-norm, ReLU; PyTorch defaults) ----
    for l in range(num_layers):
        Wl = Wcols_ref[l]                         # (D, 8D), resident in VMEM
        bl = bias_ref[l]                          # (8, 4D)
        W_qkv = Wl[:, 0:3 * D]
        W_o = Wl[:, 3 * D:4 * D]
        W_ff1 = Wl[:, 4 * D:8 * D]
        b_qkv = bl[0:1, 0:3 * D]
        b_o = bl[1:2, 0:D]
        ln1_g = bl[2:3, 0:D]
        ln1_b = bl[3:4, 0:D]
        b_ff1 = bl[4:5, 0:4 * D]
        b_ff2 = bl[5:6, 0:D]
        ln2_g = bl[6:7, 0:D]
        ln2_b = bl[7:8, 0:D]

        # --- multi-head self-attention, whole batch at once ---
        qkv = jnp.dot(h, W_qkv, preferred_element_type=jnp.float32) + b_qkv
        heads = []
        for hh in range(H):                       # H static & small -> unrolled
            c = hh * Dh
            q = qkv[:, c:c + Dh].reshape(B, S, Dh)
            k = qkv[:, D + c:D + c + Dh].reshape(B, S, Dh)
            v = qkv[:, 2 * D + c:2 * D + c + Dh].reshape(B, S, Dh)
            s = jnp.einsum('bqd,bkd->bqk', q, k,
                           preferred_element_type=jnp.float32) * scale
            s = s - jnp.max(s, axis=-1, keepdims=True)
            p = jnp.exp(s)
            p = p / jnp.sum(p, axis=-1, keepdims=True)
            ctx = jnp.einsum('bqk,bkd->bqd', p, v,
                             preferred_element_type=jnp.float32)
            heads.append(ctx.reshape(R, Dh))
        attn = jnp.concatenate(heads, axis=-1)    # (R, D), stays in vregs

        attn_out = jnp.dot(attn, W_o, preferred_element_type=jnp.float32) + b_o
        h = layer_norm(h + attn_out, ln1_g, ln1_b)

        # --- feed-forward (ReLU) ---
        ff = jnp.dot(h, W_ff1, preferred_element_type=jnp.float32) + b_ff1
        ff = jnp.maximum(ff, 0.0)
        ff = jnp.dot(ff, Wff2_ref[l], preferred_element_type=jnp.float32) + b_ff2
        h = layer_norm(h + ff, ln2_g, ln2_b)

    # ---- project ONLY the last sequence position of each batch element ----
    last_rows = [h[b * S + S - 1: b * S + S, :] for b in range(B)]
    h_last = jnp.concatenate(last_rows, axis=0)                   # (B, D)
    out = jnp.dot(h_last, W_out_ref[...], preferred_element_type=jnp.float32)
    out_ref[...] = out + b_out_ref[...]                           # one 2-D store


# --------------------------- host-side packing --------------------------------

def pack_weights(params, pe):
    """Pack all parameters into a few lane-dense slabs (host-side, done once)."""
    D = params["W_emb"].shape[1]
    width = 4 * D

    def row(v):                                   # (1, w) -> (1, 4*D)
        return jnp.pad(v, ((0, 0), (0, width - v.shape[1])))

    Wcols, Wff2, bias = [], [], []
    for lp in params["layers"]:
        Wcols.append(jnp.concatenate([lp["W_qkv"], lp["W_o"], lp["W_ff1"]],
                                     axis=1))                     # (D, 8D)
        Wff2.append(lp["W_ff2"])                                  # (4D, D)
        bias.append(jnp.concatenate(
            [row(lp["b_qkv"]), row(lp["b_o"]), row(lp["ln1_g"]), row(lp["ln1_b"]),
             row(lp["b_ff1"]), row(lp["b_ff2"]), row(lp["ln2_g"]), row(lp["ln2_b"])],
            axis=0))                                              # (8, 4D)

    return {
        "pe_bias": pe + params["b_emb"],          # fold embedding bias into PE
        "W_emb": params["W_emb"],
        "W_out": params["W_out"],
        "b_out": params["b_out"],
        "Wcols": jnp.stack(Wcols, axis=0),        # (L, D, 8D)
        "Wff2": jnp.stack(Wff2, axis=0),          # (L, 4D, D)
        "bias_slab": jnp.stack(bias, axis=0),     # (L, 8, 4D)
    }


# ------------------------------ wrapper --------------------------------------

def _const_block(shape):
    zeros = (0,) * len(shape)
    return pl.BlockSpec(shape, lambda i: zeros)   # full array, resident in VMEM


def model_forward(packed, x, num_heads):
    """x: (B, S, input_dim) -> (B, output_dim)."""
    B, S, input_dim = x.shape
    D = packed["W_emb"].shape[1]
    out_dim = packed["W_out"].shape[1]
    num_layers = packed["Wcols"].shape[0]

    x2 = x.reshape(B * S, input_dim)                       # batch along sublanes
    pe_full = jnp.tile(packed["pe_bias"], (B, 1))          # (B*S, D)

    inputs = [x2, pe_full,
              packed["W_emb"], packed["W_out"], packed["b_out"],
              packed["Wcols"], packed["Wff2"], packed["bias_slab"]]

    return pl.pallas_call(
        functools.partial(_fused_forward_kernel, B=B, S=S, D=D, H=num_heads,
                          num_layers=num_layers, eps=1e-5),
        out_shape=jax.ShapeDtypeStruct((B, out_dim), jnp.float32),
        grid=(1,),                                          # single fused step
        in_specs=[_const_block(a.shape) for a in inputs],
        out_specs=pl.BlockSpec((B, out_dim), lambda i: (0, 0)),
        compiler_params=pltpu.CompilerParams(
            dimension_semantics=("arbitrary",)),
    )(*inputs)


# --------------------------- parameters / PE ---------------------------------

def make_positional_encoding(seq_len, model_dim):
    position = jnp.arange(seq_len, dtype=jnp.float32)[:, None]
    div_term = jnp.exp(jnp.arange(0, model_dim, 2, dtype=jnp.float32)
                       * (-math.log(10000.0) / model_dim))
    pe = jnp.zeros((seq_len, model_dim), dtype=jnp.float32)
    pe = pe.at[:, 0::2].set(jnp.sin(position * div_term))
    pe = pe.at[:, 1::2].set(jnp.cos(position * div_term))
    return pe


def init_params(key, input_dim, model_dim, num_heads, num_layers, output_dim):
    ff_dim = model_dim * 4
    keys = jax.random.split(key, 2 + num_layers)

    def dense(k, fan_in, fan_out):
        return 0.02 * jax.random.normal(k, (fan_in, fan_out), dtype=jnp.float32)

    params = {
        "W_emb": dense(keys[0], input_dim, model_dim),
        "b_emb": jnp.zeros((1, model_dim), jnp.float32),
        "W_out": dense(keys[1], model_dim, output_dim),
        "b_out": jnp.zeros((1, output_dim), jnp.float32),
        "layers": [],
    }
    for l in range(num_layers):
        lk = jax.random.split(keys[2 + l], 4)
        params["layers"].append({
            "W_qkv": dense(lk[0], model_dim, 3 * model_dim),
            "b_qkv": jnp.zeros((1, 3 * model_dim), jnp.float32),
            "W_o":   dense(lk[1], model_dim, model_dim),
            "b_o":   jnp.zeros((1, model_dim), jnp.float32),
            "ln1_g": jnp.ones((1, model_dim), jnp.float32),
            "ln1_b": jnp.zeros((1, model_dim), jnp.float32),
            "W_ff1": dense(lk[2], model_dim, ff_dim),
            "b_ff1": jnp.zeros((1, ff_dim), jnp.float32),
            "W_ff2": dense(lk[3], ff_dim, model_dim),
            "b_ff2": jnp.zeros((1, model_dim), jnp.float32),
            "ln2_g": jnp.ones((1, model_dim), jnp.float32),
            "ln2_b": jnp.zeros((1, model_dim), jnp.float32),
        })
    return params


# ----------------------------------- main ------------------------------------

if __name__ == "__main__":
    B, S = 2, 8
    input_dim, model_dim, num_heads, num_layers, output_dim = 8, 32, 4, 2, 8

    key = jax.random.PRNGKey(0)
    k_x, k_p = jax.random.split(key)
    x = jax.random.normal(k_x, (B, S, input_dim), dtype=jnp.float32)
    params = init_params(k_p, input_dim, model_dim, num_heads, num_layers,
                         output_dim)
    pe = make_positional_encoding(S, model_dim)

    packed = pack_weights(params, pe)             # host-side packing, once

    fwd = jax.jit(functools.partial(model_forward, packed,
                                    num_heads=num_heads))
    out = fwd(x)
    jax.block_until_ready(out)
    assert out.shape == (B, output_dim) and out.dtype == jnp.float32
    assert bool(jnp.all(jnp.isfinite(out)))
    print("KERNEL_OK")
</pallas_src>

<mosaic_0001>
module attributes {stable_mosaic.version = 11 : i64} {
  func.func @_fused_forward_kernel(%arg0: i32, %arg1: memref<16x8xf32, #tpu.memory_space<vmem>>, %arg2: memref<16x32xf32, #tpu.memory_space<vmem>>, %arg3: memref<8x32xf32, #tpu.memory_space<vmem>>, %arg4: memref<32x8xf32, #tpu.memory_space<vmem>>, %arg5: memref<1x8xf32, #tpu.memory_space<vmem>>, %arg6: memref<2x32x256xf32, #tpu.memory_space<vmem>>, %arg7: memref<2x128x32xf32, #tpu.memory_space<vmem>>, %arg8: memref<2x8x128xf32, #tpu.memory_space<vmem>>, %arg9: memref<2x8xf32, #tpu.memory_space<vmem>>) attributes {dimension_semantics = [#tpu.dimension_semantics<arbitrary>], iteration_bounds = array<i64: 1>, scalar_prefetch = 0 : i64, scratch_operands = 0 : i64, tpu.core_type = #tpu.core_type<tc>, window_params = [{pipeline_mode = #tpu.pipeline_mode<synchronous>, transform_indices = @transform_0, window_bounds = array<i64: 16, 8>}, {pipeline_mode = #tpu.pipeline_mode<synchronous>, transform_indices = @transform_1, window_bounds = array<i64: 16, 32>}, {pipeline_mode = #tpu.pipeline_mode<synchronous>, transform_indices = @transform_2, window_bounds = array<i64: 8, 32>}, {pipeline_mode = #tpu.pipeline_mode<synchronous>, transform_indices = @transform_3, window_bounds = array<i64: 32, 8>}, {pipeline_mode = #tpu.pipeline_mode<synchronous>, transform_indices = @transform_4, window_bounds = array<i64: 1, 8>}, {pipeline_mode = #tpu.pipeline_mode<synchronous>, transform_indices = @transform_5, window_bounds = array<i64: 2, 32, 256>}, {pipeline_mode = #tpu.pipeline_mode<synchronous>, transform_indices = @transform_6, window_bounds = array<i64: 2, 128, 32>}, {pipeline_mode = #tpu.pipeline_mode<synchronous>, transform_indices = @transform_7, window_bounds = array<i64: 2, 8, 128>}, {pipeline_mode = #tpu.pipeline_mode<synchronous>, transform_indices = @transform_8, window_bounds = array<i64: 2, 8>}]} {
    %c0 = arith.constant 0 : index
    %c0_0 = arith.constant 0 : index
    %0 = vector.load %arg1[%c0, %c0_0] : memref<16x8xf32, #tpu.memory_space<vmem>>, vector<16x8xf32>
    %c0_1 = arith.constant 0 : index
    %c0_2 = arith.constant 0 : index
    %1 = vector.load %arg3[%c0_1, %c0_2] : memref<8x32xf32, #tpu.memory_space<vmem>>, vector<8x32xf32>
    %cst = arith.constant dense<0.000000e+00> : vector<16x32xf32>
    %2 = tpu.matmul %0, %1, %cst {dimension_numbers = #tpu.dot_dimension_numbers<[1], [0], [0], [1], [0, 0, 1, 1], [], []>} : vector<16x8xf32>, vector<8x32xf32>, vector<16x32xf32> -> vector<16x32xf32>
    %c0_3 = arith.constant 0 : index
    %c0_4 = arith.constant 0 : index
    %3 = vector.load %arg2[%c0_3, %c0_4] : memref<16x32xf32, #tpu.memory_space<vmem>>, vector<16x32xf32>
    %4 = arith.addf %2, %3 : vector<16x32xf32>
    %c0_5 = arith.constant 0 : index
    %c0_6 = arith.constant 0 : index
    %c0_7 = arith.constant 0 : index
    %5 = vector.load %arg6[%c0_5, %c0_6, %c0_7] : memref<2x32x256xf32, #tpu.memory_space<vmem>>, vector<1x32x256xf32>
    %6 = vector.shape_cast %5 : vector<1x32x256xf32> to vector<32x256xf32>
    %c0_8 = arith.constant 0 : index
    %c0_9 = arith.constant 0 : index
    %c0_10 = arith.constant 0 : index
    %7 = vector.load %arg8[%c0_8, %c0_9, %c0_10] : memref<2x8x128xf32, #tpu.memory_space<vmem>>, vector<1x8x128xf32>
    %8 = vector.shape_cast %7 : vector<1x8x128xf32> to vector<8x128xf32>
    %9 = vector.extract_strided_slice %6 {offsets = [0, 0], sizes = [32, 96], strides = [1, 1]} : vector<32x256xf32> to vector<32x96xf32>
    %10 = vector.extract_strided_slice %6 {offsets = [0, 96], sizes = [32, 32], strides = [1, 1]} : vector<32x256xf32> to vector<32x32xf32>
    %11 = vector.extract_strided_slice %6 {offsets = [0, 128], sizes = [32, 128], strides = [1, 1]} : vector<32x256xf32> to vector<32x128xf32>
    %12 = vector.extract_strided_slice %8 {offsets = [0, 0], sizes = [1, 96], strides = [1, 1]} : vector<8x128xf32> to vector<1x96xf32>
    %13 = vector.extract_strided_slice %8 {offsets = [1, 0], sizes = [1, 32], strides = [1, 1]} : vector<8x128xf32> to vector<1x32xf32>
    %14 = vector.extract_strided_slice %8 {offsets = [2, 0], sizes = [1, 32], strides = [1, 1]} : vector<8x128xf32> to vector<1x32xf32>
    %15 = vector.extract_strided_slice %8 {offsets = [3, 0], sizes = [1, 32], strides = [1, 1]} : vector<8x128xf32> to vector<1x32xf32>
    %16 = vector.extract_strided_slice %8 {offsets = [4, 0], sizes = [1, 128], strides = [1, 1]} : vector<8x128xf32> to vector<1x128xf32>
    %17 = vector.extract_strided_slice %8 {offsets = [5, 0], sizes = [1, 32], strides = [1, 1]} : vector<8x128xf32> to vector<1x32xf32>
    %18 = vector.extract_strided_slice %8 {offsets = [6, 0], sizes = [1, 32], strides = [1, 1]} : vector<8x128xf32> to vector<1x32xf32>
    %19 = vector.extract_strided_slice %8 {offsets = [7, 0], sizes = [1, 32], strides = [1, 1]} : vector<8x128xf32> to vector<1x32xf32>
    %cst_11 = arith.constant dense<0.000000e+00> : vector<16x96xf32>
    %20 = tpu.matmul %4, %9, %cst_11 {dimension_numbers = #tpu.dot_dimension_numbers<[1], [0], [0], [1], [0, 0, 1, 1], [], []>} : vector<16x32xf32>, vector<32x96xf32>, vector<16x96xf32> -> vector<16x96xf32>
    %21 = vector.broadcast %12 : vector<1x96xf32> to vector<16x96xf32>
    %22 = arith.addf %20, %21 : vector<16x96xf32>
    %23 = vector.extract_strided_slice %22 {offsets = [0, 0], sizes = [16, 8], strides = [1, 1]} : vector<16x96xf32> to vector<16x8xf32>
    %24 = vector.shape_cast %23 : vector<16x8xf32> to vector<2x8x8xf32>
    %25 = vector.extract_strided_slice %22 {offsets = [0, 32], sizes = [16, 8], strides = [1, 1]} : vector<16x96xf32> to vector<16x8xf32>
    %26 = vector.shape_cast %25 : vector<16x8xf32> to vector<2x8x8xf32>
    %27 = vector.extract_strided_slice %22 {offsets = [0, 64], sizes = [16, 8], strides = [1, 1]} : vector<16x96xf32> to vector<16x8xf32>
    %28 = vector.shape_cast %27 : vector<16x8xf32> to vector<2x8x8xf32>
    "tpu.trace_start"() <{level = 10 : i32, message = "bqd,bkd->bqk"}> : () -> ()
    %cst_12 = arith.constant dense<0.000000e+00> : vector<2x8x8xf32>
    %29 = tpu.matmul %24, %26, %cst_12 {dimension_numbers = #tpu.dot_dimension_numbers<[2], [2], [1], [1], [0, 0, 0, 1, 1, 1], [0], [0]>} : vector<2x8x8xf32>, vector<2x8x8xf32>, vector<2x8x8xf32> -> vector<2x8x8xf32>
    "tpu.trace_stop"() : () -> ()
    %cst_13 = arith.constant 0.353553385 : f32
    %30 = vector.broadcast %cst_13 : f32 to vector<2x8x8xf32>
    %31 = arith.mulf %29, %30 : vector<2x8x8xf32>
    %cst_14 = arith.constant dense<0xFF800000> : vector<2x8xf32>
    %32 = vector.multi_reduction <maximumf>, %31, %cst_14 [2] : vector<2x8x8xf32> to vector<2x8xf32>
    %33 = vector.shape_cast %32 : vector<2x8xf32> to vector<2x8x1xf32>
    %34 = vector.broadcast %33 : vector<2x8x1xf32> to vector<2x8x8xf32>
    %35 = arith.subf %31, %34 : vector<2x8x8xf32>
    %36 = math.exp %35 : vector<2x8x8xf32>
    %cst_15 = arith.constant dense<0.000000e+00> : vector<2x8xf32>
    %37 = vector.multi_reduction <add>, %36, %cst_15 [2] : vector<2x8x8xf32> to vector<2x8xf32>
    %38 = vector.shape_cast %37 : vector<2x8xf32> to vector<2x8x1xf32>
    %39 = vector.broadcast %38 : vector<2x8x1xf32> to vector<2x8x8xf32>
    %40 = arith.divf %36, %39 : vector<2x8x8xf32>
    "tpu.trace_start"() <{level = 10 : i32, message = "bqk,bkd->bqd"}> : () -> ()
    %cst_16 = arith.constant dense<0.000000e+00> : vector<2x8x8xf32>
    %41 = tpu.matmul %40, %28, %cst_16 {dimension_numbers = #tpu.dot_dimension_numbers<[2], [1], [1], [2], [0, 0, 0, 1, 1, 2], [0], [0]>} : vector<2x8x8xf32>, vector<2x8x8xf32>, vector<2x8x8xf32> -> vector<2x8x8xf32>
    "tpu.trace_stop"() : () -> ()
    %42 = vector.shape_cast %41 : vector<2x8x8xf32> to vector<16x8xf32>
    %43 = vector.extract_strided_slice %22 {offsets = [0, 8], sizes = [16, 8], strides = [1, 1]} : vector<16x96xf32> to vector<16x8xf32>
    %44 = vector.shape_cast %43 : vector<16x8xf32> to vector<2x8x8xf32>
    %45 = vector.extract_strided_slice %22 {offsets = [0, 40], sizes = [16, 8], strides = [1, 1]} : vector<16x96xf32> to vector<16x8xf32>
    %46 = vector.shape_cast %45 : vector<16x8xf32> to vector<2x8x8xf32>
    %47 = vector.extract_strided_slice %22 {offsets = [0, 72], sizes = [16, 8], strides = [1, 1]} : vector<16x96xf32> to vector<16x8xf32>
    %48 = vector.shape_cast %47 : vector<16x8xf32> to vector<2x8x8xf32>
    "tpu.trace_start"() <{level = 10 : i32, message = "bqd,bkd->bqk"}> : () -> ()
    %cst_17 = arith.constant dense<0.000000e+00> : vector<2x8x8xf32>
    %49 = tpu.matmul %44, %46, %cst_17 {dimension_numbers = #tpu.dot_dimension_numbers<[2], [2], [1], [1], [0, 0, 0, 1, 1, 1], [0], [0]>} : vector<2x8x8xf32>, vector<2x8x8xf32>, vector<2x8x8xf32> -> vector<2x8x8xf32>
    "tpu.trace_stop"() : () -> ()
    %cst_18 = arith.constant 0.353553385 : f32
    %50 = vector.broadcast %cst_18 : f32 to vector<2x8x8xf32>
    %51 = arith.mulf %49, %50 : vector<2x8x8xf32>
    %cst_19 = arith.constant dense<0xFF800000> : vector<2x8xf32>
    %52 = vector.multi_reduction <maximumf>, %51, %cst_19 [2] : vector<2x8x8xf32> to vector<2x8xf32>
    %53 = vector.shape_cast %52 : vector<2x8xf32> to vector<2x8x1xf32>
    %54 = vector.broadcast %53 : vector<2x8x1xf32> to vector<2x8x8xf32>
    %55 = arith.subf %51, %54 : vector<2x8x8xf32>
    %56 = math.exp %55 : vector<2x8x8xf32>
    %cst_20 = arith.constant dense<0.000000e+00> : vector<2x8xf32>
    %57 = vector.multi_reduction <add>, %56, %cst_20 [2] : vector<2x8x8xf32> to vector<2x8xf32>
    %58 = vector.shape_cast %57 : vector<2x8xf32> to vector<2x8x1xf32>
    %59 = vector.broadcast %58 : vector<2x8x1xf32> to vector<2x8x8xf32>
    %60 = arith.divf %56, %59 : vector<2x8x8xf32>
    "tpu.trace_start"() <{level = 10 : i32, message = "bqk,bkd->bqd"}> : () -> ()
    %cst_21 = arith.constant dense<0.000000e+00> : vector<2x8x8xf32>
    %61 = tpu.matmul %60, %48, %cst_21 {dimension_numbers = #tpu.dot_dimension_numbers<[2], [1], [1], [2], [0, 0, 0, 1, 1, 2], [0], [0]>} : vector<2x8x8xf32>, vector<2x8x8xf32>, vector<2x8x8xf32> -> vector<2x8x8xf32>
    "tpu.trace_stop"() : () -> ()
    %62 = vector.shape_cast %61 : vector<2x8x8xf32> to vector<16x8xf32>
    %63 = vector.extract_strided_slice %22 {offsets = [0, 16], sizes = [16, 8], strides = [1, 1]} : vector<16x96xf32> to vector<16x8xf32>
    %64 = vector.shape_cast %63 : vector<16x8xf32> to vector<2x8x8xf32>
    %65 = vector.extract_strided_slice %22 {offsets = [0, 48], sizes = [16, 8], strides = [1, 1]} : vector<16x96xf32> to vector<16x8xf32>
    %66 = vector.shape_cast %65 : vector<16x8xf32> to vector<2x8x8xf32>
    %67 = vector.extract_strided_slice %22 {offsets = [0, 80], sizes = [16, 8], strides = [1, 1]} : vector<16x96xf32> to vector<16x8xf32>
    %68 = vector.shape_cast %67 : vector<16x8xf32> to vector<2x8x8xf32>
    "tpu.trace_start"() <{level = 10 : i32, message = "bqd,bkd->bqk"}> : () -> ()
    %cst_22 = arith.constant dense<0.000000e+00> : vector<2x8x8xf32>
    %69 = tpu.matmul %64, %66, %cst_22 {dimension_numbers = #tpu.dot_dimension_numbers<[2], [2], [1], [1], [0, 0, 0, 1, 1, 1], [0], [0]>} : vector<2x8x8xf32>, vector<2x8x8xf32>, vector<2x8x8xf32> -> vector<2x8x8xf32>
    "tpu.trace_stop"() : () -> ()
    %cst_23 = arith.constant 0.353553385 : f32
    %70 = vector.broadcast %cst_23 : f32 to vector<2x8x8xf32>
    %71 = arith.mulf %69, %70 : vector<2x8x8xf32>
    %cst_24 = arith.constant dense<0xFF800000> : vector<2x8xf32>
    %72 = vector.multi_reduction <maximumf>, %71, %cst_24 [2] : vector<2x8x8xf32> to vector<2x8xf32>
    %73 = vector.shape_cast %72 : vector<2x8xf32> to vector<2x8x1xf32>
    %74 = vector.broadcast %73 : vector<2x8x1xf32> to vector<2x8x8xf32>
    %75 = arith.subf %71, %74 : vector<2x8x8xf32>
    %76 = math.exp %75 : vector<2x8x8xf32>
    %cst_25 = arith.constant dense<0.000000e+00> : vector<2x8xf32>
    %77 = vector.multi_reduction <add>, %76, %cst_25 [2] : vector<2x8x8xf32> to vector<2x8xf32>
    %78 = vector.shape_cast %77 : vector<2x8xf32> to vector<2x8x1xf32>
    %79 = vector.broadcast %78 : vector<2x8x1xf32> to vector<2x8x8xf32>
    %80 = arith.divf %76, %79 : vector<2x8x8xf32>
    "tpu.trace_start"() <{level = 10 : i32, message = "bqk,bkd->bqd"}> : () -> ()
    %cst_26 = arith.constant dense<0.000000e+00> : vector<2x8x8xf32>
    %81 = tpu.matmul %80, %68, %cst_26 {dimension_numbers = #tpu.dot_dimension_numbers<[2], [1], [1], [2], [0, 0, 0, 1, 1, 2], [0], [0]>} : vector<2x8x8xf32>, vector<2x8x8xf32>, vector<2x8x8xf32> -> vector<2x8x8xf32>
    "tpu.trace_stop"() : () -> ()
    %82 = vector.shape_cast %81 : vector<2x8x8xf32> to vector<16x8xf32>
    %83 = vector.extract_strided_slice %22 {offsets = [0, 24], sizes = [16, 8], strides = [1, 1]} : vector<16x96xf32> to vector<16x8xf32>
    %84 = vector.shape_cast %83 : vector<16x8xf32> to vector<2x8x8xf32>
    %85 = vector.extract_strided_slice %22 {offsets = [0, 56], sizes = [16, 8], strides = [1, 1]} : vector<16x96xf32> to vector<16x8xf32>
    %86 = vector.shape_cast %85 : vector<16x8xf32> to vector<2x8x8xf32>
    %87 = vector.extract_strided_slice %22 {offsets = [0, 88], sizes = [16, 8], strides = [1, 1]} : vector<16x96xf32> to vector<16x8xf32>
    %88 = vector.shape_cast %87 : vector<16x8xf32> to vector<2x8x8xf32>
    "tpu.trace_start"() <{level = 10 : i32, message = "bqd,bkd->bqk"}> : () -> ()
    %cst_27 = arith.constant dense<0.000000e+00> : vector<2x8x8xf32>
    %89 = tpu.matmul %84, %86, %cst_27 {dimension_numbers = #tpu.dot_dimension_numbers<[2], [2], [1], [1], [0, 0, 0, 1, 1, 1], [0], [0]>} : vector<2x8x8xf32>, vector<2x8x8xf32>, vector<2x8x8xf32> -> vector<2x8x8xf32>
    "tpu.trace_stop"() : () -> ()
    %cst_28 = arith.constant 0.353553385 : f32
    %90 = vector.broadcast %cst_28 : f32 to vector<2x8x8xf32>
    %91 = arith.mulf %89, %90 : vector<2x8x8xf32>
    %cst_29 = arith.constant dense<0xFF800000> : vector<2x8xf32>
    %92 = vector.multi_reduction <maximumf>, %91, %cst_29 [2] : vector<2x8x8xf32> to vector<2x8xf32>
    %93 = vector.shape_cast %92 : vector<2x8xf32> to vector<2x8x1xf32>
    %94 = vector.broadcast %93 : vector<2x8x1xf32> to vector<2x8x8xf32>
    %95 = arith.subf %91, %94 : vector<2x8x8xf32>
    %96 = math.exp %95 : vector<2x8x8xf32>
    %cst_30 = arith.constant dense<0.000000e+00> : vector<2x8xf32>
    %97 = vector.multi_reduction <add>, %96, %cst_30 [2] : vector<2x8x8xf32> to vector<2x8xf32>
    %98 = vector.shape_cast %97 : vector<2x8xf32> to vector<2x8x1xf32>
    %99 = vector.broadcast %98 : vector<2x8x1xf32> to vector<2x8x8xf32>
    %100 = arith.divf %96, %99 : vector<2x8x8xf32>
    "tpu.trace_start"() <{level = 10 : i32, message = "bqk,bkd->bqd"}> : () -> ()
    %cst_31 = arith.constant dense<0.000000e+00> : vector<2x8x8xf32>
    %101 = tpu.matmul %100, %88, %cst_31 {dimension_numbers = #tpu.dot_dimension_numbers<[2], [1], [1], [2], [0, 0, 0, 1, 1, 2], [0], [0]>} : vector<2x8x8xf32>, vector<2x8x8xf32>, vector<2x8x8xf32> -> vector<2x8x8xf32>
    "tpu.trace_stop"() : () -> ()
    %102 = vector.shape_cast %101 : vector<2x8x8xf32> to vector<16x8xf32>
    %103 = tpu.concatenate %42, %62, %82, %102 in 1 : vector<16x8xf32>, vector<16x8xf32>, vector<16x8xf32>, vector<16x8xf32> -> vector<16x32xf32>
    %cst_32 = arith.constant dense<0.000000e+00> : vector<16x32xf32>
    %104 = tpu.matmul %103, %10, %cst_32 {dimension_numbers = #tpu.dot_dimension_numbers<[1], [0], [0], [1], [0, 0, 1, 1], [], []>} : vector<16x32xf32>, vector<32x32xf32>, vector<16x32xf32> -> vector<16x32xf32>
    %105 = vector.broadcast %13 : vector<1x32xf32> to vector<16x32xf32>
    %106 = arith.addf %104, %105 : vector<16x32xf32>
    %107 = arith.addf %4, %106 : vector<16x32xf32>
    %cst_33 = arith.constant dense<0.000000e+00> : vector<16xf32>
    %108 = vector.multi_reduction <add>, %107, %cst_33 [1] : vector<16x32xf32> to vector<16xf32>
    %109 = vector.shape_cast %108 : vector<16xf32> to vector<16x1xf32>
    %cst_34 = arith.constant 3.200000e+01 : f32
    %110 = vector.broadcast %cst_34 : f32 to vector<16x1xf32>
    %111 = arith.divf %109, %110 : vector<16x1xf32>
    %112 = vector.broadcast %111 : vector<16x1xf32> to vector<16x32xf32>
    %113 = arith.subf %107, %112 : vector<16x32xf32>
    %114 = arith.mulf %113, %113 : vector<16x32xf32>
    %cst_35 = arith.constant dense<0.000000e+00> : vector<16xf32>
    %115 = vector.multi_reduction <add>, %114, %cst_35 [1] : vector<16x32xf32> to vector<16xf32>
    %116 = vector.shape_cast %115 : vector<16xf32> to vector<16x1xf32>
    %cst_36 = arith.constant 3.200000e+01 : f32
    %117 = vector.broadcast %cst_36 : f32 to vector<16x1xf32>
    %118 = arith.divf %116, %117 : vector<16x1xf32>
    %cst_37 = arith.constant 9.99999974E-6 : f32
    %119 = vector.broadcast %cst_37 : f32 to vector<16x1xf32>
    %120 = arith.addf %118, %119 : vector<16x1xf32>
    %121 = math.rsqrt %120 : vector<16x1xf32>
    %122 = vector.broadcast %121 : vector<16x1xf32> to vector<16x32xf32>
    %123 = arith.mulf %113, %122 : vector<16x32xf32>
    %124 = vector.broadcast %14 : vector<1x32xf32> to vector<16x32xf32>
    %125 = arith.mulf %123, %124 : vector<16x32xf32>
    %126 = vector.broadcast %15 : vector<1x32xf32> to vector<16x32xf32>
    %127 = arith.addf %125, %126 : vector<16x32xf32>
    %cst_38 = arith.constant dense<0.000000e+00> : vector<16x128xf32>
    %128 = tpu.matmul %127, %11, %cst_38 {dimension_numbers = #tpu.dot_dimension_numbers<[1], [0], [0], [1], [0, 0, 1, 1], [], []>} : vector<16x32xf32>, vector<32x128xf32>, vector<16x128xf32> -> vector<16x128xf32>
    %129 = vector.broadcast %16 : vector<1x128xf32> to vector<16x128xf32>
    %130 = arith.addf %128, %129 : vector<16x128xf32>
    %cst_39 = arith.constant 0.000000e+00 : f32
    %131 = vector.broadcast %cst_39 : f32 to vector<16x128xf32>
    %132 = arith.maximumf %130, %131 : vector<16x128xf32>
    %c0_40 = arith.constant 0 : index
    %c0_41 = arith.constant 0 : index
    %c0_42 = arith.constant 0 : index
    %133 = vector.load %arg7[%c0_40, %c0_41, %c0_42] : memref<2x128x32xf32, #tpu.memory_space<vmem>>, vector<1x128x32xf32>
    %134 = vector.shape_cast %133 : vector<1x128x32xf32> to vector<128x32xf32>
    %cst_43 = arith.constant dense<0.000000e+00> : vector<16x32xf32>
    %135 = tpu.matmul %132, %134, %cst_43 {dimension_numbers = #tpu.dot_dimension_numbers<[1], [0], [0], [1], [0, 0, 1, 1], [], []>} : vector<16x128xf32>, vector<128x32xf32>, vector<16x32xf32> -> vector<16x32xf32>
    %136 = vector.broadcast %17 : vector<1x32xf32> to vector<16x32xf32>
    %137 = arith.addf %135, %136 : vector<16x32xf32>
    %138 = arith.addf %127, %137 : vector<16x32xf32>
    %cst_44 = arith.constant dense<0.000000e+00> : vector<16xf32>
    %139 = vector.multi_reduction <add>, %138, %cst_44 [1] : vector<16x32xf32> to vector<16xf32>
    %140 = vector.shape_cast %139 : vector<16xf32> to vector<16x1xf32>
    %cst_45 = arith.constant 3.200000e+01 : f32
    %141 = vector.broadcast %cst_45 : f32 to vector<16x1xf32>
    %142 = arith.divf %140, %141 : vector<16x1xf32>
    %143 = vector.broadcast %142 : vector<16x1xf32> to vector<16x32xf32>
    %144 = arith.subf %138, %143 : vector<16x32xf32>
    %145 = arith.mulf %144, %144 : vector<16x32xf32>
    %cst_46 = arith.constant dense<0.000000e+00> : vector<16xf32>
    %146 = vector.multi_reduction <add>, %145, %cst_46 [1] : vector<16x32xf32> to vector<16xf32>
    %147 = vector.shape_cast %146 : vector<16xf32> to vector<16x1xf32>
    %cst_47 = arith.constant 3.200000e+01 : f32
    %148 = vector.broadcast %cst_47 : f32 to vector<16x1xf32>
    %149 = arith.divf %147, %148 : vector<16x1xf32>
    %cst_48 = arith.constant 9.99999974E-6 : f32
    %150 = vector.broadcast %cst_48 : f32 to vector<16x1xf32>
    %151 = arith.addf %149, %150 : vector<16x1xf32>
    %152 = math.rsqrt %151 : vector<16x1xf32>
    %153 = vector.broadcast %152 : vector<16x1xf32> to vector<16x32xf32>
    %154 = arith.mulf %144, %153 : vector<16x32xf32>
    %155 = vector.broadcast %18 : vector<1x32xf32> to vector<16x32xf32>
    %156 = arith.mulf %154, %155 : vector<16x32xf32>
    %157 = vector.broadcast %19 : vector<1x32xf32> to vector<16x32xf32>
    %158 = arith.addf %156, %157 : vector<16x32xf32>
    %c1 = arith.constant 1 : index
    %c0_49 = arith.constant 0 : index
    %c0_50 = arith.constant 0 : index
    %159 = vector.load %arg6[%c1, %c0_49, %c0_50] : memref<2x32x256xf32, #tpu.memory_space<vmem>>, vector<1x32x256xf32>
    %160 = vector.shape_cast %159 : vector<1x32x256xf32> to vector<32x256xf32>
    %c1_51 = arith.constant 1 : index
    %c0_52 = arith.constant 0 : index
    %c0_53 = arith.constant 0 : index
    %161 = vector.load %arg8[%c1_51, %c0_52, %c0_53] : memref<2x8x128xf32, #tpu.memory_space<vmem>>, vector<1x8x128xf32>
    %162 = vector.shape_cast %161 : vector<1x8x128xf32> to vector<8x128xf32>
    %163 = vector.extract_strided_slice %160 {offsets = [0, 0], sizes = [32, 96], strides = [1, 1]} : vector<32x256xf32> to vector<32x96xf32>
    %164 = vector.extract_strided_slice %160 {offsets = [0, 96], sizes = [32, 32], strides = [1, 1]} : vector<32x256xf32> to vector<32x32xf32>
    %165 = vector.extract_strided_slice %160 {offsets = [0, 128], sizes = [32, 128], strides = [1, 1]} : vector<32x256xf32> to vector<32x128xf32>
    %166 = vector.extract_strided_slice %162 {offsets = [0, 0], sizes = [1, 96], strides = [1, 1]} : vector<8x128xf32> to vector<1x96xf32>
    %167 = vector.extract_strided_slice %162 {offsets = [1, 0], sizes = [1, 32], strides = [1, 1]} : vector<8x128xf32> to vector<1x32xf32>
    %168 = vector.extract_strided_slice %162 {offsets = [2, 0], sizes = [1, 32], strides = [1, 1]} : vector<8x128xf32> to vector<1x32xf32>
    %169 = vector.extract_strided_slice %162 {offsets = [3, 0], sizes = [1, 32], strides = [1, 1]} : vector<8x128xf32> to vector<1x32xf32>
    %170 = vector.extract_strided_slice %162 {offsets = [4, 0], sizes = [1, 128], strides = [1, 1]} : vector<8x128xf32> to vector<1x128xf32>
    %171 = vector.extract_strided_slice %162 {offsets = [5, 0], sizes = [1, 32], strides = [1, 1]} : vector<8x128xf32> to vector<1x32xf32>
    %172 = vector.extract_strided_slice %162 {offsets = [6, 0], sizes = [1, 32], strides = [1, 1]} : vector<8x128xf32> to vector<1x32xf32>
    %173 = vector.extract_strided_slice %162 {offsets = [7, 0], sizes = [1, 32], strides = [1, 1]} : vector<8x128xf32> to vector<1x32xf32>
    %cst_54 = arith.constant dense<0.000000e+00> : vector<16x96xf32>
    %174 = tpu.matmul %158, %163, %cst_54 {dimension_numbers = #tpu.dot_dimension_numbers<[1], [0], [0], [1], [0, 0, 1, 1], [], []>} : vector<16x32xf32>, vector<32x96xf32>, vector<16x96xf32> -> vector<16x96xf32>
    %175 = vector.broadcast %166 : vector<1x96xf32> to vector<16x96xf32>
    %176 = arith.addf %174, %175 : vector<16x96xf32>
    %177 = vector.extract_strided_slice %176 {offsets = [0, 0], sizes = [16, 8], strides = [1, 1]} : vector<16x96xf32> to vector<16x8xf32>
    %178 = vector.shape_cast %177 : vector<16x8xf32> to vector<2x8x8xf32>
    %179 = vector.extract_strided_slice %176 {offsets = [0, 32], sizes = [16, 8], strides = [1, 1]} : vector<16x96xf32> to vector<16x8xf32>
    %180 = vector.shape_cast %179 : vector<16x8xf32> to vector<2x8x8xf32>
    %181 = vector.extract_strided_slice %176 {offsets = [0, 64], sizes = [16, 8], strides = [1, 1]} : vector<16x96xf32> to vector<16x8xf32>
    %182 = vector.shape_cast %181 : vector<16x8xf32> to vector<2x8x8xf32>
    "tpu.trace_start"() <{level = 10 : i32, message = "bqd,bkd->bqk"}> : () -> ()
    %cst_55 = arith.constant dense<0.000000e+00> : vector<2x8x8xf32>
    %183 = tpu.matmul %178, %180, %cst_55 {dimension_numbers = #tpu.dot_dimension_numbers<[2], [2], [1], [1], [0, 0, 0, 1, 1, 1], [0], [0]>} : vector<2x8x8xf32>, vector<2x8x8xf32>, vector<2x8x8xf32> -> vector<2x8x8xf32>
    "tpu.trace_stop"() : () -> ()
    %cst_56 = arith.constant 0.353553385 : f32
    %184 = vector.broadcast %cst_56 : f32 to vector<2x8x8xf32>
    %185 = arith.mulf %183, %184 : vector<2x8x8xf32>
    %cst_57 = arith.constant dense<0xFF800000> : vector<2x8xf32>
    %186 = vector.multi_reduction <maximumf>, %185, %cst_57 [2] : vector<2x8x8xf32> to vector<2x8xf32>
    %187 = vector.shape_cast %186 : vector<2x8xf32> to vector<2x8x1xf32>
    %188 = vector.broadcast %187 : vector<2x8x1xf32> to vector<2x8x8xf32>
    %189 = arith.subf %185, %188 : vector<2x8x8xf32>
    %190 = math.exp %189 : vector<2x8x8xf32>
    %cst_58 = arith.constant dense<0.000000e+00> : vector<2x8xf32>
    %191 = vector.multi_reduction <add>, %190, %cst_58 [2] : vector<2x8x8xf32> to vector<2x8xf32>
    %192 = vector.shape_cast %191 : vector<2x8xf32> to vector<2x8x1xf32>
    %193 = vector.broadcast %192 : vector<2x8x1xf32> to vector<2x8x8xf32>
    %194 = arith.divf %190, %193 : vector<2x8x8xf32>
    "tpu.trace_start"() <{level = 10 : i32, message = "bqk,bkd->bqd"}> : () -> ()
    %cst_59 = arith.constant dense<0.000000e+00> : vector<2x8x8xf32>
    %195 = tpu.matmul %194, %182, %cst_59 {dimension_numbers = #tpu.dot_dimension_numbers<[2], [1], [1], [2], [0, 0, 0, 1, 1, 2], [0], [0]>} : vector<2x8x8xf32>, vector<2x8x8xf32>, vector<2x8x8xf32> -> vector<2x8x8xf32>
    "tpu.trace_stop"() : () -> ()
    %196 = vector.shape_cast %195 : vector<2x8x8xf32> to vector<16x8xf32>
    %197 = vector.extract_strided_slice %176 {offsets = [0, 8], sizes = [16, 8], strides = [1, 1]} : vector<16x96xf32> to vector<16x8xf32>
    %198 = vector.shape_cast %197 : vector<16x8xf32> to vector<2x8x8xf32>
    %199 = vector.extract_strided_slice %176 {offsets = [0, 40], sizes = [16, 8], strides = [1, 1]} : vector<16x96xf32> to vector<16x8xf32>
    %200 = vector.shape_cast %199 : vector<16x8xf32> to vector<2x8x8xf32>
    %201 = vector.extract_strided_slice %176 {offsets = [0, 72], sizes = [16, 8], strides = [1, 1]} : vector<16x96xf32> to vector<16x8xf32>
    %202 = vector.shape_cast %201 : vector<16x8xf32> to vector<2x8x8xf32>
    "tpu.trace_start"() <{level = 10 : i32, message = "bqd,bkd->bqk"}> : () -> ()
    %cst_60 = arith.constant dense<0.000000e+00> : vector<2x8x8xf32>
    %203 = tpu.matmul %198, %200, %cst_60 {dimension_numbers = #tpu.dot_dimension_numbers<[2], [2], [1], [1], [0, 0, 0, 1, 1, 1], [0], [0]>} : vector<2x8x8xf32>, vector<2x8x8xf32>, vector<2x8x8xf32> -> vector<2x8x8xf32>
    "tpu.trace_stop"() : () -> ()
    %cst_61 = arith.constant 0.353553385 : f32
    %204 = vector.broadcast %cst_61 : f32 to vector<2x8x8xf32>
    %205 = arith.mulf %203, %204 : vector<2x8x8xf32>
    %cst_62 = arith.constant dense<0xFF800000> : vector<2x8xf32>
    %206 = vector.multi_reduction <maximumf>, %205, %cst_62 [2] : vector<2x8x8xf32> to vector<2x8xf32>
    %207 = vector.shape_cast %206 : vector<2x8xf32> to vector<2x8x1xf32>
    %208 = vector.broadcast %207 : vector<2x8x1xf32> to vector<2x8x8xf32>
    %209 = arith.subf %205, %208 : vector<2x8x8xf32>
    %210 = math.exp %209 : vector<2x8x8xf32>
    %cst_63 = arith.constant dense<0.000000e+00> : vector<2x8xf32>
    %211 = vector.multi_reduction <add>, %210, %cst_63 [2] : vector<2x8x8xf32> to vector<2x8xf32>
    %212 = vector.shape_cast %211 : vector<2x8xf32> to vector<2x8x1xf32>
    %213 = vector.broadcast %212 : vector<2x8x1xf32> to vector<2x8x8xf32>
    %214 = arith.divf %210, %213 : vector<2x8x8xf32>
    "tpu.trace_start"() <{level = 10 : i32, message = "bqk,bkd->bqd"}> : () -> ()
    %cst_64 = arith.constant dense<0.000000e+00> : vector<2x8x8xf32>
    %215 = tpu.matmul %214, %202, %cst_64 {dimension_numbers = #tpu.dot_dimension_numbers<[2], [1], [1], [2], [0, 0, 0, 1, 1, 2], [0], [0]>} : vector<2x8x8xf32>, vector<2x8x8xf32>, vector<2x8x8xf32> -> vector<2x8x8xf32>
    "tpu.trace_stop"() : () -> ()
    %216 = vector.shape_cast %215 : vector<2x8x8xf32> to vector<16x8xf32>
    %217 = vector.extract_strided_slice %176 {offsets = [0, 16], sizes = [16, 8], strides = [1, 1]} : vector<16x96xf32> to vector<16x8xf32>
    %218 = vector.shape_cast %217 : vector<16x8xf32> to vector<2x8x8xf32>
    %219 = vector.extract_strided_slice %176 {offsets = [0, 48], sizes = [16, 8], strides = [1, 1]} : vector<16x96xf32> to vector<16x8xf32>
    %220 = vector.shape_cast %219 : vector<16x8xf32> to vector<2x8x8xf32>
    %221 = vector.extract_strided_slice %176 {offsets = [0, 80], sizes = [16, 8], strides = [1, 1]} : vector<16x96xf32> to vector<16x8xf32>
    %222 = vector.shape_cast %221 : vector<16x8xf32> to vector<2x8x8xf32>
    "tpu.trace_start"() <{level = 10 : i32, message = "bqd,bkd->bqk"}> : () -> ()
    %cst_65 = arith.constant dense<0.000000e+00> : vector<2x8x8xf32>
    %223 = tpu.matmul %218, %220, %cst_65 {dimension_numbers = #tpu.dot_dimension_numbers<[2], [2], [1], [1], [0, 0, 0, 1, 1, 1], [0], [0]>} : vector<2x8x8xf32>, vector<2x8x8xf32>, vector<2x8x8xf32> -> vector<2x8x8xf32>
    "tpu.trace_stop"() : () -> ()
    %cst_66 = arith.constant 0.353553385 : f32
    %224 = vector.broadcast %cst_66 : f32 to vector<2x8x8xf32>
    %225 = arith.mulf %223, %224 : vector<2x8x8xf32>
    %cst_67 = arith.constant dense<0xFF800000> : vector<2x8xf32>
    %226 = vector.multi_reduction <maximumf>, %225, %cst_67 [2] : vector<2x8x8xf32> to vector<2x8xf32>
    %227 = vector.shape_cast %226 : vector<2x8xf32> to vector<2x8x1xf32>
    %228 = vector.broadcast %227 : vector<2x8x1xf32> to vector<2x8x8xf32>
    %229 = arith.subf %225, %228 : vector<2x8x8xf32>
    %230 = math.exp %229 : vector<2x8x8xf32>
    %cst_68 = arith.constant dense<0.000000e+00> : vector<2x8xf32>
    %231 = vector.multi_reduction <add>, %230, %cst_68 [2] : vector<2x8x8xf32> to vector<2x8xf32>
    %232 = vector.shape_cast %231 : vector<2x8xf32> to vector<2x8x1xf32>
    %233 = vector.broadcast %232 : vector<2x8x1xf32> to vector<2x8x8xf32>
    %234 = arith.divf %230, %233 : vector<2x8x8xf32>
    "tpu.trace_start"() <{level = 10 : i32, message = "bqk,bkd->bqd"}> : () -> ()
    %cst_69 = arith.constant dense<0.000000e+00> : vector<2x8x8xf32>
    %235 = tpu.matmul %234, %222, %cst_69 {dimension_numbers = #tpu.dot_dimension_numbers<[2], [1], [1], [2], [0, 0, 0, 1, 1, 2], [0], [0]>} : vector<2x8x8xf32>, vector<2x8x8xf32>, vector<2x8x8xf32> -> vector<2x8x8xf32>
    "tpu.trace_stop"() : () -> ()
    %236 = vector.shape_cast %235 : vector<2x8x8xf32> to vector<16x8xf32>
    %237 = vector.extract_strided_slice %176 {offsets = [0, 24], sizes = [16, 8], strides = [1, 1]} : vector<16x96xf32> to vector<16x8xf32>
    %238 = vector.shape_cast %237 : vector<16x8xf32> to vector<2x8x8xf32>
    %239 = vector.extract_strided_slice %176 {offsets = [0, 56], sizes = [16, 8], strides = [1, 1]} : vector<16x96xf32> to vector<16x8xf32>
    %240 = vector.shape_cast %239 : vector<16x8xf32> to vector<2x8x8xf32>
    %241 = vector.extract_strided_slice %176 {offsets = [0, 88], sizes = [16, 8], strides = [1, 1]} : vector<16x96xf32> to vector<16x8xf32>
    %242 = vector.shape_cast %241 : vector<16x8xf32> to vector<2x8x8xf32>
    "tpu.trace_start"() <{level = 10 : i32, message = "bqd,bkd->bqk"}> : () -> ()
    %cst_70 = arith.constant dense<0.000000e+00> : vector<2x8x8xf32>
    %243 = tpu.matmul %238, %240, %cst_70 {dimension_numbers = #tpu.dot_dimension_numbers<[2], [2], [1], [1], [0, 0, 0, 1, 1, 1], [0], [0]>} : vector<2x8x8xf32>, vector<2x8x8xf32>, vector<2x8x8xf32> -> vector<2x8x8xf32>
    "tpu.trace_stop"() : () -> ()
    %cst_71 = arith.constant 0.353553385 : f32
    %244 = vector.broadcast %cst_71 : f32 to vector<2x8x8xf32>
    %245 = arith.mulf %243, %244 : vector<2x8x8xf32>
    %cst_72 = arith.constant dense<0xFF800000> : vector<2x8xf32>
    %246 = vector.multi_reduction <maximumf>, %245, %cst_72 [2] : vector<2x8x8xf32> to vector<2x8xf32>
    %247 = vector.shape_cast %246 : vector<2x8xf32> to vector<2x8x1xf32>
    %248 = vector.broadcast %247 : vector<2x8x1xf32> to vector<2x8x8xf32>
    %249 = arith.subf %245, %248 : vector<2x8x8xf32>
    %250 = math.exp %249 : vector<2x8x8xf32>
    %cst_73 = arith.constant dense<0.000000e+00> : vector<2x8xf32>
    %251 = vector.multi_reduction <add>, %250, %cst_73 [2] : vector<2x8x8xf32> to vector<2x8xf32>
    %252 = vector.shape_cast %251 : vector<2x8xf32> to vector<2x8x1xf32>
    %253 = vector.broadcast %252 : vector<2x8x1xf32> to vector<2x8x8xf32>
    %254 = arith.divf %250, %253 : vector<2x8x8xf32>
    "tpu.trace_start"() <{level = 10 : i32, message = "bqk,bkd->bqd"}> : () -> ()
    %cst_74 = arith.constant dense<0.000000e+00> : vector<2x8x8xf32>
    %255 = tpu.matmul %254, %242, %cst_74 {dimension_numbers = #tpu.dot_dimension_numbers<[2], [1], [1], [2], [0, 0, 0, 1, 1, 2], [0], [0]>} : vector<2x8x8xf32>, vector<2x8x8xf32>, vector<2x8x8xf32> -> vector<2x8x8xf32>
    "tpu.trace_stop"() : () -> ()
    %256 = vector.shape_cast %255 : vector<2x8x8xf32> to vector<16x8xf32>
    %257 = tpu.concatenate %196, %216, %236, %256 in 1 : vector<16x8xf32>, vector<16x8xf32>, vector<16x8xf32>, vector<16x8xf32> -> vector<16x32xf32>
    %cst_75 = arith.constant dense<0.000000e+00> : vector<16x32xf32>
    %258 = tpu.matmul %257, %164, %cst_75 {dimension_numbers = #tpu.dot_dimension_numbers<[1], [0], [0], [1], [0, 0, 1, 1], [], []>} : vector<16x32xf32>, vector<32x32xf32>, vector<16x32xf32> -> vector<16x32xf32>
    %259 = vector.broadcast %167 : vector<1x32xf32> to vector<16x32xf32>
    %260 = arith.addf %258, %259 : vector<16x32xf32>
    %261 = arith.addf %158, %260 : vector<16x32xf32>
    %cst_76 = arith.constant dense<0.000000e+00> : vector<16xf32>
    %262 = vector.multi_reduction <add>, %261, %cst_76 [1] : vector<16x32xf32> to vector<16xf32>
    %263 = vector.shape_cast %262 : vector<16xf32> to vector<16x1xf32>
    %cst_77 = arith.constant 3.200000e+01 : f32
    %264 = vector.broadcast %cst_77 : f32 to vector<16x1xf32>
    %265 = arith.divf %263, %264 : vector<16x1xf32>
    %266 = vector.broadcast %265 : vector<16x1xf32> to vector<16x32xf32>
    %267 = arith.subf %261, %266 : vector<16x32xf32>
    %268 = arith.mulf %267, %267 : vector<16x32xf32>
    %cst_78 = arith.constant dense<0.000000e+00> : vector<16xf32>
    %269 = vector.multi_reduction <add>, %268, %cst_78 [1] : vector<16x32xf32> to vector<16xf32>
    %270 = vector.shape_cast %269 : vector<16xf32> to vector<16x1xf32>
    %cst_79 = arith.constant 3.200000e+01 : f32
    %271 = vector.broadcast %cst_79 : f32 to vector<16x1xf32>
    %272 = arith.divf %270, %271 : vector<16x1xf32>
    %cst_80 = arith.constant 9.99999974E-6 : f32
    %273 = vector.broadcast %cst_80 : f32 to vector<16x1xf32>
    %274 = arith.addf %272, %273 : vector<16x1xf32>
    %275 = math.rsqrt %274 : vector<16x1xf32>
    %276 = vector.broadcast %275 : vector<16x1xf32> to vector<16x32xf32>
    %277 = arith.mulf %267, %276 : vector<16x32xf32>
    %278 = vector.broadcast %168 : vector<1x32xf32> to vector<16x32xf32>
    %279 = arith.mulf %277, %278 : vector<16x32xf32>
    %280 = vector.broadcast %169 : vector<1x32xf32> to vector<16x32xf32>
    %281 = arith.addf %279, %280 : vector<16x32xf32>
    %cst_81 = arith.constant dense<0.000000e+00> : vector<16x128xf32>
    %282 = tpu.matmul %281, %165, %cst_81 {dimension_numbers = #tpu.dot_dimension_numbers<[1], [0], [0], [1], [0, 0, 1, 1], [], []>} : vector<16x32xf32>, vector<32x128xf32>, vector<16x128xf32> -> vector<16x128xf32>
    %283 = vector.broadcast %170 : vector<1x128xf32> to vector<16x128xf32>
    %284 = arith.addf %282, %283 : vector<16x128xf32>
    %cst_82 = arith.constant 0.000000e+00 : f32
    %285 = vector.broadcast %cst_82 : f32 to vector<16x128xf32>
    %286 = arith.maximumf %284, %285 : vector<16x128xf32>
    %c1_83 = arith.constant 1 : index
    %c0_84 = arith.constant 0 : index
    %c0_85 = arith.constant 0 : index
    %287 = vector.load %arg7[%c1_83, %c0_84, %c0_85] : memref<2x128x32xf32, #tpu.memory_space<vmem>>, vector<1x128x32xf32>
    %288 = vector.shape_cast %287 : vector<1x128x32xf32> to vector<128x32xf32>
    %cst_86 = arith.constant dense<0.000000e+00> : vector<16x32xf32>
    %289 = tpu.matmul %286, %288, %cst_86 {dimension_numbers = #tpu.dot_dimension_numbers<[1], [0], [0], [1], [0, 0, 1, 1], [], []>} : vector<16x128xf32>, vector<128x32xf32>, vector<16x32xf32> -> vector<16x32xf32>
    %290 = vector.broadcast %171 : vector<1x32xf32> to vector<16x32xf32>
    %291 = arith.addf %289, %290 : vector<16x32xf32>
    %292 = arith.addf %281, %291 : vector<16x32xf32>
    %cst_87 = arith.constant dense<0.000000e+00> : vector<16xf32>
    %293 = vector.multi_reduction <add>, %292, %cst_87 [1] : vector<16x32xf32> to vector<16xf32>
    %294 = vector.shape_cast %293 : vector<16xf32> to vector<16x1xf32>
    %cst_88 = arith.constant 3.200000e+01 : f32
    %295 = vector.broadcast %cst_88 : f32 to vector<16x1xf32>
    %296 = arith.divf %294, %295 : vector<16x1xf32>
    %297 = vector.broadcast %296 : vector<16x1xf32> to vector<16x32xf32>
    %298 = arith.subf %292, %297 : vector<16x32xf32>
    %299 = arith.mulf %298, %298 : vector<16x32xf32>
    %cst_89 = arith.constant dense<0.000000e+00> : vector<16xf32>
    %300 = vector.multi_reduction <add>, %299, %cst_89 [1] : vector<16x32xf32> to vector<16xf32>
    %301 = vector.shape_cast %300 : vector<16xf32> to vector<16x1xf32>
    %cst_90 = arith.constant 3.200000e+01 : f32
    %302 = vector.broadcast %cst_90 : f32 to vector<16x1xf32>
    %303 = arith.divf %301, %302 : vector<16x1xf32>
    %cst_91 = arith.constant 9.99999974E-6 : f32
    %304 = vector.broadcast %cst_91 : f32 to vector<16x1xf32>
    %305 = arith.addf %303, %304 : vector<16x1xf32>
    %306 = math.rsqrt %305 : vector<16x1xf32>
    %307 = vector.broadcast %306 : vector<16x1xf32> to vector<16x32xf32>
    %308 = arith.mulf %298, %307 : vector<16x32xf32>
    %309 = vector.broadcast %172 : vector<1x32xf32> to vector<16x32xf32>
    %310 = arith.mulf %308, %309 : vector<16x32xf32>
    %311 = vector.broadcast %173 : vector<1x32xf32> to vector<16x32xf32>
    %312 = arith.addf %310, %311 : vector<16x32xf32>
    %313 = vector.extract_strided_slice %312 {offsets = [7, 0], sizes = [1, 32], strides = [1, 1]} : vector<16x32xf32> to vector<1x32xf32>
    %314 = vector.extract_strided_slice %312 {offsets = [15, 0], sizes = [1, 32], strides = [1, 1]} : vector<16x32xf32> to vector<1x32xf32>
    %315 = tpu.concatenate %313, %314 in 0 : vector<1x32xf32>, vector<1x32xf32> -> vector<2x32xf32>
    %c0_92 = arith.constant 0 : index
    %c0_93 = arith.constant 0 : index
    %316 = vector.load %arg4[%c0_92, %c0_93] : memref<32x8xf32, #tpu.memory_space<vmem>>, vector<32x8xf32>
    %cst_94 = arith.constant dense<0.000000e+00> : vector<2x8xf32>
    %317 = tpu.matmul %315, %316, %cst_94 {dimension_numbers = #tpu.dot_dimension_numbers<[1], [0], [0], [1], [0, 0, 1, 1], [], []>} : vector<2x32xf32>, vector<32x8xf32>, vector<2x8xf32> -> vector<2x8xf32>
    %c0_95 = arith.constant 0 : index
    %c0_96 = arith.constant 0 : index
    %318 = vector.load %arg5[%c0_95, %c0_96] : memref<1x8xf32, #tpu.memory_space<vmem>>, vector<1x8xf32>
    %319 = vector.broadcast %318 : vector<1x8xf32> to vector<2x8xf32>
    %320 = arith.addf %317, %319 : vector<2x8xf32>
    %c0_97 = arith.constant 0 : index
    %c0_98 = arith.constant 0 : index
    %321 = vector.load %arg9[%c0_97, %c0_98] : memref<2x8xf32, #tpu.memory_space<vmem>>, vector<2x8xf32>
    tpu.vector_store %arg9[%c0_97, %c0_98], %320 {strides = array<i32>} : memref<2x8xf32, #tpu.memory_space<vmem>>, vector<2x8xf32>,
    return
  }
  func.func @transform_0(%arg0: i32) -> (i32, i32) {
    %c0_i32 = arith.constant 0 : i32
    %c0_i32_0 = arith.constant 0 : i32
    %c0_i32_1 = arith.constant 0 : i32
    return %c0_i32, %c0_i32_0 : i32, i32
  }
  func.func @transform_1(%arg0: i32) -> (i32, i32) {
    %c0_i32 = arith.constant 0 : i32
    %c0_i32_0 = arith.constant 0 : i32
    %c0_i32_1 = arith.constant 0 : i32
    return %c0_i32, %c0_i32_0 : i32, i32
  }
  func.func @transform_2(%arg0: i32) -> (i32, i32) {
    %c0_i32 = arith.constant 0 : i32
    %c0_i32_0 = arith.constant 0 : i32
    %c0_i32_1 = arith.constant 0 : i32
    return %c0_i32, %c0_i32_0 : i32, i32
  }
  func.func @transform_3(%arg0: i32) -> (i32, i32) {
    %c0_i32 = arith.constant 0 : i32
    %c0_i32_0 = arith.constant 0 : i32
    %c0_i32_1 = arith.constant 0 : i32
    return %c0_i32, %c0_i32_0 : i32, i32
  }
  func.func @transform_4(%arg0: i32) -> (i32, i32) {
    %c0_i32 = arith.constant 0 : i32
    %c0_i32_0 = arith.constant 0 : i32
    %c0_i32_1 = arith.constant 0 : i32
    return %c0_i32, %c0_i32_0 : i32, i32
  }
  func.func @transform_5(%arg0: i32) -> (i32, i32, i32) {
    %c0_i32 = arith.constant 0 : i32
    %c0_i32_0 = arith.constant 0 : i32
    %c0_i32_1 = arith.constant 0 : i32
    %c0_i32_2 = arith.constant 0 : i32
    return %c0_i32, %c0_i32_0, %c0_i32_1 : i32, i32, i32
  }
  func.func @transform_6(%arg0: i32) -> (i32, i32, i32) {
    %c0_i32 = arith.constant 0 : i32
    %c0_i32_0 = arith.constant 0 : i32
    %c0_i32_1 = arith.constant 0 : i32
    %c0_i32_2 = arith.constant 0 : i32
    return %c0_i32, %c0_i32_0, %c0_i32_1 : i32, i32, i32
  }
  func.func @transform_7(%arg0: i32) -> (i32, i32, i32) {
    %c0_i32 = arith.constant 0 : i32
    %c0_i32_0 = arith.constant 0 : i32
    %c0_i32_1 = arith.constant 0 : i32
    %c0_i32_2 = arith.constant 0 : i32
    return %c0_i32, %c0_i32_0, %c0_i32_1 : i32, i32, i32
  }
  func.func @transform_8(%arg0: i32) -> (i32, i32) {
    %c0_i32 = arith.constant 0 : i32
    %c0_i32_0 = arith.constant 0 : i32
    %c0_i32_1 = arith.constant 0 : i32
    return %c0_i32, %c0_i32_0 : i32, i32
  }
}

</mosaic_0001>

<bundles_post_ra>
// kernel: model_forward.1
= control target key start
LH: loop header
LB: loop body
LE: loop exit
PB: predicated region body
PF: predicated region fallthrough
CT: control target
= control target key end

     0   :  { %13 = vsyncpa [#allocation3], 0  ;;  %s5459_s0 = inlined_call_operand.hbm [shape: f32[16,8], index: 0, kind: input, shape index: {}]   ;;  %s5460_s1 = inlined_call_operand.vmem [shape: f32[16,32], index: 1, kind: input, shape index: {}]   ;;  %s5461_s2 = inlined_call_operand.hbm [shape: f32[8,32], index: 2, kind: input, shape index: {}]   ;;  %s5462_s3 = inlined_call_operand.vmem [shape: f32[32,8], index: 3, kind: input, shape index: {}]   ;;  %s5463_s4 = inlined_call_operand.vmem [shape: f32[1,8], index: 4, kind: input, shape index: {}]   ;;  %s5464_s5 = inlined_call_operand.hbm [shape: f32[2,32,256], index: 5, kind: input, shape index: {}]   ;;  %s5465_s6 = inlined_call_operand.hbm [shape: f32[2,128,32], index: 6, kind: input, shape index: {}]   ;;  %s5466_s7 = inlined_call_operand.vmem [shape: f32[2,8,128], index: 7, kind: input, shape index: {}]   ;;  %s5467_s8 = inlined_call_operand.hbm [shape: f32[2,8], index: 8, kind: output, shape index: {}]  }
   0x1   :  { %14 = vsyncpa [#allocation6], 0 }
   0x2   :  { %15 = vsyncpa [#allocation9], 0 }
   0x3   :  { %16 = vsyncpa [#allocation4], 0  ;;  %s4796_s27 = smov [#allocation5]   ;;  %s4797_s29 = smov [#allocation2]  }
   0x4   :  { %s37_s28 = sshll.u32 %s4796_s27, 4  ;;  %s22_s30 = sshll.u32 %s4797_s29, 4  ;;  %s38_s28 = int_to_ptr.vmem [resolvable:$true] %s37_s28  ;;  %s4866_s30 = int_to_ptr.vmem [resolvable:$true] %s22_s30 }
   0x5   :  { %s4678_s11 = scalar_lea.hbm %s5461_s2, 128 }
   0x6   :  { %p4679_p0 = scmp.ne.s32.totalorder %s5461_s2, %s4678_s11  ;;  %p4682_p1 = scmp.lt.u32.totalorder %s4678_s11, %s5461_s2 }
   0x8   :  { %p4684_p2 = pnand %p4682_p1, %p4679_p0 }
   0xa   :  { %4687 = shalt.err (!%p4684_p2)
}
   0xb   :  { %s4688_s16 = scalar_lea.vmem %s38_s28, 128  ;;  %p4693_p4 = scmp.lt.s32.totalorder %s38_s28, %s38_s28 }
   0xc   :  { %p4689_p3 = scmp.ne.s32.totalorder %s38_s28, %s4688_s16  ;;  %p4694_p5 = scmp.lt.s32.totalorder %s4688_s16, %s4688_s16 }
   0xe   :  { %p4695_p6 = por %p4694_p5, %p4693_p4 }
  0x10   :  { %p4696_p7 = pnand %p4695_p6, %p4689_p3 }
  0x12   :  { %4699 = shalt.err (!%p4696_p7)
}
  0x13   :  { %40 = dma.hbm_to_vmem [thread:$0]  %s5461_s2, 128, %s38_s28, [#allocation6]  }
  0x14   :  { %s4700_s21 = scalar_lea.hbm %s5459_s0, 256 }
  0x15   :  { %p4701_p8 = scmp.ne.s32.totalorder %s5459_s0, %s4700_s21  ;;  %p4704_p9 = scmp.lt.u32.totalorder %s4700_s21, %s5459_s0 }
  0x17   :  { %p4706_p10 = pnand %p4704_p9, %p4701_p8 }
  0x19   :  { %4709 = shalt.err (!%p4706_p10)
}
  0x1a   :  { %s4710_s26 = scalar_lea.vmem %s4866_s30, 256  ;;  %p4715_p12 = scmp.lt.s32.totalorder %s4866_s30, %s4866_s30 }
  0x1b   :  { %p4711_p11 = scmp.ne.s32.totalorder %s4866_s30, %s4710_s26  ;;  %p4716_p13 = scmp.lt.s32.totalorder %s4710_s26, %s4710_s26 }
  0x1d   :  { %p4717_p0 = por %p4716_p13, %p4715_p12 }
  0x1f   :  { %p4718_p1 = pnand %p4717_p0, %p4711_p11 }
  0x21   :  { %4721 = shalt.err (!%p4718_p1)
}
  0x22   :  { %s4798_s2 = smov 128   ;;  %s4799_s27 = smov 8  }
  0x23   :  { %28 = dma.hbm_to_vmem [thread:$0]  %s5459_s0, 256, %s4866_s30, [#allocation3], %s4798_s2, %s4798_s2, %s4799_s27  }
  0x24   :  { %s4800_s9 = smov [#allocation7]   ;;  %s4722_s13 = scalar_lea.hbm %s5464_s5, 2048 }
  0x25   :  { %s50_s10 = sshll.u32 %s4800_s9, 4  ;;  %p4723_p2 = scmp.ne.s32.totalorder %s5464_s5, %s4722_s13  ;;  %s51_s10 = int_to_ptr.vmem [resolvable:$true] %s50_s10 }
  0x26   :  { %p4726_p3 = scmp.lt.u32.totalorder %s4722_s13, %s5464_s5 }
  0x28   :  { %p4728_p4 = pnand %p4726_p3, %p4723_p2 }
  0x2a   :  { %4731 = shalt.err (!%p4728_p4)
}
  0x2b   :  { %s4732_s18 = scalar_lea.vmem %s51_s10, 2048  ;;  %p4737_p6 = scmp.lt.s32.totalorder %s51_s10, %s51_s10 }
  0x2c   :  { %p4733_p5 = scmp.ne.s32.totalorder %s51_s10, %s4732_s18  ;;  %p4738_p7 = scmp.lt.s32.totalorder %s4732_s18, %s4732_s18 }
  0x2e   :  { %p4739_p8 = por %p4738_p7, %p4737_p6 }
  0x30   :  { %p4740_p9 = pnand %p4739_p8, %p4733_p5 }
  0x32   :  { %4743 = shalt.err (!%p4740_p9)
}
  0x33   :  { %s4801_s0 = smov 256   ;;  %s4802_s30 = smov 16  }
  0x34   :  { %56 = dma.hbm_to_vmem [thread:$0]  %s5464_s5, 2048, %s51_s10, [#allocation6], %s4801_s0, %s4801_s0, %s4802_s30  }
  0x35   :  { %s4803_s21 = smov [#allocation8]   ;;  %s4744_s25 = scalar_lea.hbm %s5465_s6, 4096 }
  0x36   :  { %s62_s22 = sshll.u32 %s4803_s21, 4  ;;  %p4745_p10 = scmp.ne.s32.totalorder %s5465_s6, %s4744_s25  ;;  %s63_s22 = int_to_ptr.vmem [resolvable:$true] %s62_s22 }
  0x37   :  { %p4748_p11 = scmp.lt.u32.totalorder %s4744_s25, %s5465_s6 }
  0x39   :  { %p4750_p12 = pnand %p4748_p11, %p4745_p10 }
  0x3b   :  { %4753 = shalt.err (!%p4750_p12)
}
  0x3c   :  { %s4754_s11 = scalar_lea.vmem %s63_s22, 4096  ;;  %p4759_p0 = scmp.lt.s32.totalorder %s63_s22, %s63_s22 }
  0x3d   :  { %p4755_p13 = scmp.ne.s32.totalorder %s63_s22, %s4754_s11  ;;  %p4760_p1 = scmp.lt.s32.totalorder %s4754_s11, %s4754_s11 }
  0x3f   :  { %p4761_p2 = por %p4760_p1, %p4759_p0 }
  0x41   :  { %p4762_p3 = pnand %p4761_p2, %p4755_p13 }
  0x43   :  { %4765 = shalt.err (!%p4762_p3)
}
  0x44   :  { %68 = dma.hbm_to_vmem [thread:$0]  %s5465_s6, 4096, %s63_s22, [#allocation9], %s4798_s2, %s4798_s2, %s4799_s27  }
  0x45   :  { %4788 = dma.done.wait [#allocation3], 256  }
  0x46   :  { %4789 = vsyncadd [#allocation3], 4294967040 }
  0x47   :  { %4790 = dma.done.wait [#allocation6], 2176  }
  0x48   :  { %4791 = vsyncadd [#allocation6], 4294965120 }
  0x49   :  { %4792 = dma.done.wait [#allocation9], 4096  }
  0x4a   :  { %4793 = vsyncadd [#allocation9], 4294963200  ;;  %vm88_vm0 = vcmask 64512   ;;  %v85_v0 = vld [vmem:[#allocation5] sm:$0xff]  ;;  %v83_v1 = vld [vmem:[#allocation2] sm:$0xff]  ;;  %vm183_vm1 = vcmask 261120   ;;  %v179_v16 = vlaneseq }
  0x4b   :  { %v84_v2 = vld [vmem:[#allocation2 + $0x8] sm:$0xff]  ;;  %4123 = vmatprep.subr.mxu0 %v85_v0  ;;  %4125 = vmatprep.mubr.msk.f32.mxu0 %vm88_vm0, %v83_v1  ;;  %v4929_v3 = vld [vmem:[#allocation7] sm:$0xff]  ;;  %v86_v9 = vld [vmem:[%s5460_s1] sm:$0xff]  ;;  %v4804_v15 = vmov 0.0   ;;  %vm4805_vm2 = vmmov 0   ;;  %s4806_s15 = smov 96  }
  0x4c   :  { %v4931_v4 = vld [vmem:[#allocation7 + $0x10] sm:$0xff]  ;;  %4124 = vmatpush3.msra.mxu0 %v85_v0  ;;  %v4936_v6 = vld [vmem:[#allocation7 + $0x20] sm:$0xff]  ;;  %4149 = vmatprep.subr.mxu1 %v4804_v15  ;;  %v4958_v17 = vshrl.u32 %v179_v16, 7  ;;  %v4968_v19 = vld [vmem:[%s5466_s7] sm:$0xff]  ;;  %s4807_s16 = smov 64   ;;  %s4808_s17 = smov 88  }
  0x4d   :  { %v4435_v5 = vpack.c.bf16 %v4931_v4, %v4929_v3  ;;  %4126 = vmatmul.mubr.msk.f32.vlgmr.msra.gmra.mrb[0].mxu0 %vm88_vm0, %v84_v2  ;;  %v4938_v7 = vld [vmem:[#allocation7 + $0x30] sm:$0xff]  ;;  %4151 = vmatprep.mubr.msk.f32.mxu1 %vm4805_vm2, %v4804_v15  ;;  %s4809_s18 = smov 120   ;;  %s4810_s0 = smov 56   ;;  %vm1620_vm3 = vcmask 195584   ;;  %vm1617_vm4 = vcmask 130048   ;;  %vm3809_vm5 = vcmask 1040384  }
  0x4e   :  { %v4439_v8 = vpack.c.bf16 %v4938_v7, %v4936_v6  ;;  %v87_v10 = vld [vmem:[%s5460_s1 + $0x8] sm:$0xff]  ;;  %v181_v18 = vsub.s32 0, %v4958_v17  ;;  %s4811_s19 = smov 80   ;;  %s4812_s20 = smov 112   ;;  %vm3895_vm6 = vcmask 58368  }
  0x4f   :  { %4436 = vmatprep.subr.bf16.mxu0 %v4435_v5  ;;  %s4813_s21 = smov 48   ;;  %s4814_s22 = smov 72  }
  0x50   :  { %4438 = vmatpush3.bf16.msra.mxu0 %v4435_v5  ;;  %v182_v20 = vrot.slane %v4968_v19, %v181_v18  ;;  %s4815_s23 = smov 104   ;;  %s4816_s24 = smov 40  }
  0x51   :  { %4440 = vmatprep.subr.bf16.mxu0 %v4439_v8  ;;  %s4817_s25 = smov 32   ;;  %s4818_s26 = smov 24  }
  0x52   :  { %s4820_s12 = smov [#allocation10]  }
  0x53   :  { %s3903_s13 = sshll.u32 %s4820_s12, 4  ;;  %s3904_s13 = int_to_ptr.vmem [resolvable:$true] %s3903_s13 }
  0x54   :  { %4442 = vmatpush3.bf16.msra.mxu0 %v4439_v8  ;;  %s4766_s1 = scalar_lea.vmem %s3904_s13, 32  ;;  %p4771_p5 = scmp.lt.s32.totalorder %s3904_s13, %s3904_s13 }
  0x55   :  { %4139 = vmatprep.subr.mxu0 %v4804_v15  ;;  %p4767_p4 = scmp.ne.s32.totalorder %s3904_s13, %s4766_s1  ;;  %p4772_p6 = scmp.lt.s32.totalorder %s4766_s1, %s4766_s1 }
  0x57   :  { %p4773_p7 = por %p4772_p6, %p4771_p5 }
  0x59   :  { %p4774_p8 = pnand %p4773_p7, %p4767_p4 }
 0x120   :  { %v4127_v11 = vpop.f32.mrb[0].mxu0 }
 0x121   :  { %v161_v12 = vpop.f32.mrb[1].mxu0  ;;  %v4950_v14 = vadd.f32 %v4127_v11, %v87_v10 }
 0x122   :  { %v4948_v13 = vadd.f32 %v161_v12, %v86_v9 }
 0x124   :  { %4136 = vmatprep.mubr.msk.f32.mxu0 %vm183_vm1, %v4948_v13 }
 0x125   :  { %4137 = vmatmul.mubr.msk.f32.vlgmr.msra.gmra.mrb[2].mxu0 %vm183_vm1, %v4950_v14 }
 0x126   :  { %4141 = vmatprep.mubr.msk.f32.mxu0 %vm4805_vm2, %v4804_v15 }
 0x1f8   :  { %v4138_v21 = vpop.f32.mrb[2].mxu0 }
 0x1f9   :  { %v256_v22 = vpop.f32.mrb[3].mxu0  ;;  %v4977_v24 = vadd.f32 %v4138_v21, %v182_v20 }
 0x1fa   :  { %v4973_v23 = vadd.f32 %v256_v22, %v182_v20 }
 0x1fc   :  { %266 = vrot.lane.b32.xlu0 %v4973_v23, %s4806_s15 }
 0x200   :  { %343 = vrot.lane.b32.xlu0 %v4977_v24, %s4806_s15 }
 0x26e   :  { %v267_v25 = vpop.permute.xlu0 %266 }
 0x26f   :  { %4140 = vmatpush3.xpose.msk.msra.mxu0 %vm88_vm0, %v267_v25 }
 0x270   :  { %4144 = vmatprep.subr.mxu0 %v4804_v15 }
 0x272   :  { %4142 = vmatmul.mubr.msk.f32.vlgmr.msra.gmra.mrb[4].mxu0 %vm88_vm0, %v4973_v23  ;;  %v344_v26 = vpop.permute.xlu0 %343 }
 0x273   :  { %4145 = vmatpush3.xpose.msk.msra.mxu0 %vm88_vm0, %v344_v26  ;;  %4146 = vmatprep.mubr.msk.f32.mxu0 %vm4805_vm2, %v4804_v15 }
 0x274   :  { %4154 = vmatprep.subr.mxu0 %v4804_v15 }
 0x276   :  { %4147 = vmatmul.mubr.msk.f32.vlgmr.msra.gmra.mrb[6].mxu0 %vm88_vm0, %v4977_v24 }
 0x277   :  { %4156 = vmatprep.mubr.msk.f32.mxu0 %vm4805_vm2, %v4804_v15 }
 0x345   :  { %v338_v27 = vpop.f32.mrb[4].mxu0 }
 0x346   :  { %v419_v28 = vmul.f32 0.35355338, %v338_v27  ;;  %v4143_v29 = vpop.f32.mrb[5].mxu0 }
 0x348   :  { %v421_v30 = vsel %vm88_vm0, %v419_v28, -inf }
 0x349   :  { %422 = vmax.xlane.f32.xlu1 %v421_v30  ;;  %v415_v31 = vpop.f32.mrb[6].mxu0 }
 0x34a   :  { %v420_v32 = vmul.f32 0.35355338, %v415_v31  ;;  %v4148_v33 = vpop.f32.mrb[7].mxu0 }
 0x34c   :  { %v424_v34 = vsel %vm88_vm0, %v420_v32, -inf }
 0x34d   :  { %425 = vmax.xlane.f32.xlu1 %v424_v34 }
 0x35e   :  { %443 = vrot.lane.b32.xlu1 %v4973_v23, %s4807_s16 }
 0x362   :  { %519 = vrot.lane.b32.xlu1 %v4977_v24, %s4807_s16 }
 0x366   :  { %597 = vrot.lane.b32.xlu1 %v4973_v23, %s4808_s17 }
 0x36a   :  { %675 = vrot.lane.b32.xlu1 %v4977_v24, %s4808_s17 }
 0x3d6   :  { %v423_v35 = vpop.xlane.xlu1 %422 }
 0x3d7   :  { %v427_v36 = vsub.f32 %v419_v28, %v423_v35 }
 0x3d9   :  { %v429_v37 = vmul.f32 1.442695, %v427_v36 }
 0x3da   :  { %v426_v38 = vpop.xlane.xlu1 %425 }
 0x3db   :  { %4598 = vpow2.f32 %v429_v37  ;;  %v428_v39 = vsub.f32 %v420_v32, %v426_v38 }
 0x3dd   :  { %v431_v40 = vmul.f32 1.442695, %v428_v39 }
 0x3de   :  { %v444_v41 = vpop.permute.xlu1 %443 }
 0x3df   :  { %4600 = vpow2.f32 %v431_v40  ;;  %4150 = vmatpush3.msra.mxu1 %v444_v41 }
 0x3e0   :  { %4159 = vmatprep.subr.mxu1 %v4804_v15 }
 0x3e2   :  { %v520_v42 = vpop.permute.xlu1 %519 }
 0x3e3   :  { %4155 = vmatpush3.msra.mxu0 %v520_v42 }
 0x3e4   :  { %4164 = vmatprep.subr.mxu0 %v4804_v15 }
 0x3e5   :  { %v4599_v43 = vpop.eup %4598 }
 0x3e6   :  { %v433_v44 = vsel %vm88_vm0, %v4599_v43, 0.0  ;;  %v598_v47 = vpop.permute.xlu1 %597 }
 0x3e7   :  { %434 = vadd.xlane.f32.xlu0 %v433_v44 }
 0x3e9   :  { %v4601_v45 = vpop.eup %4600 }
 0x3ea   :  { %v436_v46 = vsel %vm88_vm0, %v4601_v45, 0.0  ;;  %v676_v48 = vpop.permute.xlu1 %675 }
 0x3eb   :  { %437 = vadd.xlane.f32.xlu1 %v436_v46 }
 0x3fc   :  { %673 = vrot.lane.b32.xlu1 %v4977_v24, %s4809_s18 }
 0x3fd   :  { %595 = vrot.lane.b32.xlu0 %v4973_v23, %s4809_s18 }
 0x474   :  { %v435_v49 = vpop.xlane.xlu0 %434 }
 0x475   :  { %4602 = vrcp.f32 %v435_v49 }
 0x478   :  { %v438_v50 = vpop.xlane.xlu1 %437  ;;  %v596_v55 = vpop.permute.xlu0 %595 }
 0x479   :  { %4604 = vrcp.f32 %v438_v50 }
 0x47c   :  { %v674_v56 = vpop.permute.xlu1 %673 }
 0x47f   :  { %v4603_v51 = vpop.eup %4602 }
 0x480   :  { %v440_v52 = vmul.f32 %v4603_v51, %v4599_v43 }
 0x482   :  { %4152 = vmatmul.mubr.msk.f32.vlgmr.msra.gmra.mrb[0].mxu1 %vm88_vm0, %v440_v52 }
 0x483   :  { %v4605_v53 = vpop.eup %4604  ;;  %4160 = vmatpush3.xpose.msk.msra.mxu1 %vm88_vm0, %v598_v47  ;;  %4161 = vmatprep.mubr.msk.f32.mxu1 %vm4805_vm2, %v4804_v15 }
 0x484   :  { %v442_v54 = vmul.f32 %v4605_v53, %v4601_v45  ;;  %4169 = vmatprep.subr.mxu1 %v4804_v15 }
 0x486   :  { %4157 = vmatmul.mubr.msk.f32.vlgmr.msra.gmra.mrb[8].mxu0 %vm88_vm0, %v442_v54  ;;  %4162 = vmatmul.mubr.msk.f32.vlgmr.msra.gmra.mrb[2].mxu1 %vm88_vm0, %v596_v55 }
 0x487   :  { %4165 = vmatpush3.xpose.msk.msra.mxu0 %vm88_vm0, %v676_v48  ;;  %4166 = vmatprep.mubr.msk.f32.mxu0 %vm4805_vm2, %v4804_v15 }
 0x488   :  { %4174 = vmatprep.subr.mxu0 %v4804_v15  ;;  %4171 = vmatprep.mubr.msk.f32.mxu1 %vm4805_vm2, %v4804_v15 }
 0x48a   :  { %4167 = vmatmul.mubr.msk.f32.vlgmr.msra.gmra.mrb[10].mxu0 %vm88_vm0, %v674_v56 }
 0x48b   :  { %4176 = vmatprep.mubr.msk.f32.mxu0 %vm4805_vm2, %v4804_v15 }
 0x555   :  { %v5027_v57 = vpop.f32.mrb[0].mxu1 }
 0x556   :  { %v4153_v58 = vpop.f32.mrb[1].mxu1 }
 0x559   :  { %v5029_v59 = vpop.f32.mrb[8].mxu0  ;;  %v669_v60 = vpop.f32.mrb[2].mxu1 }
 0x55a   :  { %v751_v61 = vmul.f32 0.35355338, %v669_v60  ;;  %v4158_v62 = vpop.f32.mrb[9].mxu0  ;;  %v4163_v63 = vpop.f32.mrb[3].mxu1 }
 0x55c   :  { %v753_v0 = vsel %vm88_vm0, %v751_v61, -inf }
 0x55d   :  { %v747_v1 = vpop.f32.mrb[10].mxu0  ;;  %754 = vmax.xlane.f32.xlu1 %v753_v0 }
 0x55e   :  { %v752_v2 = vmul.f32 0.35355338, %v747_v1  ;;  %v4168_v5 = vpop.f32.mrb[11].mxu0 }
 0x560   :  { %v756_v8 = vsel %vm88_vm0, %v752_v2, -inf }
 0x561   :  { %757 = vmax.xlane.f32.xlu0 %v756_v8 }
 0x56e   :  { %775 = vrot.lane.b32.xlu1 %v4973_v23, %s4810_s0 }
 0x572   :  { %929 = vrot.lane.b32.xlu1 %v4973_v23, %s4811_s19 }
 0x576   :  { %1007 = vrot.lane.b32.xlu1 %v4977_v24, %s4811_s19 }
 0x577   :  { %851 = vrot.lane.b32.xlu0 %v4977_v24, %s4810_s0 }
 0x57b   :  { %927 = vrot.lane.b32.xlu0 %v4973_v23, %s4812_s20 }
 0x5ea   :  { %v755_v9 = vpop.xlane.xlu1 %754 }
 0x5eb   :  { %v759_v10 = vsub.f32 %v751_v61, %v755_v9 }
 0x5ed   :  { %v761_v11 = vmul.f32 1.442695, %v759_v10 }
 0x5ee   :  { %v776_v12 = vpop.permute.xlu1 %775  ;;  %v758_v16 = vpop.xlane.xlu0 %757 }
 0x5ef   :  { %4606 = vpow2.f32 %v761_v11  ;;  %v760_v20 = vsub.f32 %v752_v2, %v758_v16  ;;  %4170 = vmatpush3.msra.mxu1 %v776_v12 }
 0x5f0   :  { %4179 = vmatprep.subr.mxu1 %v4804_v15 }
 0x5f1   :  { %v763_v21 = vmul.f32 1.442695, %v760_v20 }
 0x5f2   :  { %v852_v22 = vpop.permute.xlu0 %851  ;;  %v930_v29 = vpop.permute.xlu1 %929 }
 0x5f3   :  { %4608 = vpow2.f32 %v763_v21  ;;  %4175 = vmatpush3.msra.mxu0 %v852_v22 }
 0x5f4   :  { %4184 = vmatprep.subr.mxu0 %v4804_v15 }
 0x5f6   :  { %v1008_v30 = vpop.permute.xlu1 %1007  ;;  %v928_v37 = vpop.permute.xlu0 %927 }
 0x5f9   :  { %v4607_v25 = vpop.eup %4606 }
 0x5fa   :  { %v765_v26 = vsel %vm88_vm0, %v4607_v25, 0.0 }
 0x5fb   :  { %766 = vadd.xlane.f32.xlu1 %v765_v26 }
 0x5fd   :  { %v4609_v27 = vpop.eup %4608 }
 0x5fe   :  { %v768_v28 = vsel %vm88_vm0, %v4609_v27, 0.0 }
 0x5ff   :  { %769 = vadd.xlane.f32.xlu1 %v768_v28 }
 0x610   :  { %1005 = vrot.lane.b32.xlu1 %v4977_v24, %s4812_s20 }
 0x688   :  { %v767_v31 = vpop.xlane.xlu1 %766 }
 0x689   :  { %4610 = vrcp.f32 %v767_v31 }
 0x68c   :  { %v770_v32 = vpop.xlane.xlu1 %769 }
 0x68d   :  { %4612 = vrcp.f32 %v770_v32 }
 0x690   :  { %v1006_v38 = vpop.permute.xlu1 %1005 }
 0x693   :  { %v4611_v33 = vpop.eup %4610 }
 0x694   :  { %v772_v34 = vmul.f32 %v4611_v33, %v4607_v25 }
 0x696   :  { %4172 = vmatmul.mubr.msk.f32.vlgmr.msra.gmra.mrb[4].mxu1 %vm88_vm0, %v772_v34 }
 0x697   :  { %v4613_v35 = vpop.eup %4612  ;;  %4180 = vmatpush3.xpose.msk.msra.mxu1 %vm88_vm0, %v930_v29  ;;  %4181 = vmatprep.mubr.msk.f32.mxu1 %vm4805_vm2, %v4804_v15 }
 0x698   :  { %v774_v36 = vmul.f32 %v4613_v35, %v4609_v27  ;;  %4189 = vmatprep.subr.mxu1 %v4804_v15  ;;  %v4578_v35 = vpack.i.bf16 %v4931_v4, %v4929_v3 }
 0x69a   :  { %4177 = vmatmul.mubr.msk.f32.vlgmr.msra.gmra.mrb[12].mxu0 %vm88_vm0, %v774_v36  ;;  %4182 = vmatmul.mubr.msk.f32.vlgmr.msra.gmra.mrb[6].mxu1 %vm88_vm0, %v928_v37  ;;  %v4583_v36 = vpack.i.bf16 %v4938_v7, %v4936_v6 }
 0x69b   :  { %4185 = vmatpush3.xpose.msk.msra.mxu0 %vm88_vm0, %v1008_v30  ;;  %4186 = vmatprep.mubr.msk.f32.mxu0 %vm4805_vm2, %v4804_v15 }
 0x69c   :  { %4194 = vmatprep.subr.mxu0 %v4804_v15  ;;  %4191 = vmatprep.mubr.msk.f32.mxu1 %vm4805_vm2, %v4804_v15 }
 0x69e   :  { %4187 = vmatmul.mubr.msk.f32.vlgmr.msra.gmra.mrb[14].mxu0 %vm88_vm0, %v1006_v38 }
 0x69f   :  { %4196 = vmatprep.mubr.msk.f32.mxu0 %vm4805_vm2, %v4804_v15 }
 0x769   :  { %v5065_v39 = vpop.f32.mrb[4].mxu1 }
 0x76a   :  { %v4173_v40 = vpop.f32.mrb[5].mxu1 }
 0x76d   :  { %v5067_v41 = vpop.f32.mrb[12].mxu0  ;;  %v1001_v42 = vpop.f32.mrb[6].mxu1 }
 0x76e   :  { %v1083_v43 = vmul.f32 0.35355338, %v1001_v42  ;;  %v4178_v44 = vpop.f32.mrb[13].mxu0  ;;  %v4183_v45 = vpop.f32.mrb[7].mxu1 }
 0x770   :  { %v1085_v46 = vsel %vm88_vm0, %v1083_v43, -inf }
 0x771   :  { %v1079_v47 = vpop.f32.mrb[14].mxu0  ;;  %1086 = vmax.xlane.f32.xlu0 %v1085_v46 }
 0x772   :  { %v1084_v48 = vmul.f32 0.35355338, %v1079_v47  ;;  %v4188_v49 = vpop.f32.mrb[15].mxu0 }
 0x774   :  { %v1088_v50 = vsel %vm88_vm0, %v1084_v48, -inf }
 0x775   :  { %1089 = vmax.xlane.f32.xlu1 %v1088_v50 }
 0x786   :  { %1107 = vrot.lane.b32.xlu1 %v4973_v23, %s4813_s21 }
 0x787   :  { %1183 = vrot.lane.b32.xlu0 %v4977_v24, %s4813_s21 }
 0x78a   :  { %1261 = vrot.lane.b32.xlu1 %v4973_v23, %s4814_s22 }
 0x78e   :  { %1339 = vrot.lane.b32.xlu1 %v4977_v24, %s4814_s22 }
 0x792   :  { %1337 = vrot.lane.b32.xlu1 %v4977_v24, %s4815_s23 }
 0x7fe   :  { %v1087_v51 = vpop.xlane.xlu0 %1086 }
 0x7ff   :  { %v1091_v52 = vsub.f32 %v1083_v43, %v1087_v51 }
 0x801   :  { %v1093_v53 = vmul.f32 1.442695, %v1091_v52 }
 0x802   :  { %v1090_v54 = vpop.xlane.xlu1 %1089  ;;  %v1184_v55 = vpop.permute.xlu0 %1183 }
 0x803   :  { %4614 = vpow2.f32 %v1093_v53  ;;  %v1092_v56 = vsub.f32 %v1084_v48, %v1090_v54  ;;  %4195 = vmatpush3.msra.mxu0 %v1184_v55 }
 0x804   :  { %4204 = vmatprep.subr.mxu0 %v4804_v15 }
 0x805   :  { %v1095_v58 = vmul.f32 1.442695, %v1092_v56 }
 0x806   :  { %v1108_v60 = vpop.permute.xlu1 %1107 }
 0x807   :  { %4616 = vpow2.f32 %v1095_v58  ;;  %4190 = vmatpush3.msra.mxu1 %v1108_v60 }
 0x808   :  { %4199 = vmatprep.subr.mxu1 %v4804_v15 }
 0x80a   :  { %v1262_v5 = vpop.permute.xlu1 %1261 }
 0x80d   :  { %v4615_v61 = vpop.eup %4614 }
 0x80e   :  { %v1097_v62 = vsel %vm88_vm0, %v4615_v61, 0.0  ;;  %v1340_v11 = vpop.permute.xlu1 %1339 }
 0x80f   :  { %1098 = vadd.xlane.f32.xlu0 %v1097_v62 }
 0x811   :  { %v4617_v63 = vpop.eup %4616 }
 0x812   :  { %v1100_v0 = vsel %vm88_vm0, %v4617_v63, 0.0  ;;  %v1338_v20 = vpop.permute.xlu1 %1337 }
 0x813   :  { %1101 = vadd.xlane.f32.xlu0 %v1100_v0 }
 0x829   :  { %1259 = vrot.lane.b32.xlu0 %v4973_v23, %s4815_s23 }
 0x89c   :  { %v1099_v1 = vpop.xlane.xlu0 %1098 }
 0x89d   :  { %4618 = vrcp.f32 %v1099_v1 }
 0x8a0   :  { %v1102_v2 = vpop.xlane.xlu0 %1101 }
 0x8a1   :  { %4620 = vrcp.f32 %v1102_v2 }
 0x8a4   :  { %v1260_v16 = vpop.permute.xlu0 %1259 }
 0x8a7   :  { %v4619_v8 = vpop.eup %4618 }
 0x8a8   :  { %v1104_v9 = vmul.f32 %v4619_v8, %v4615_v61 }
 0x8aa   :  { %4192 = vmatmul.mubr.msk.f32.vlgmr.msra.gmra.mrb[8].mxu1 %vm88_vm0, %v1104_v9 }
 0x8ab   :  { %v4621_v10 = vpop.eup %4620  ;;  %4200 = vmatpush3.xpose.msk.msra.mxu1 %vm88_vm0, %v1262_v5  ;;  %4201 = vmatprep.mubr.msk.f32.mxu1 %vm4805_vm2, %v4804_v15 }
 0x8ac   :  { %v1106_v12 = vmul.f32 %v4621_v10, %v4617_v63  ;;  %4209 = vmatprep.subr.mxu1 %v4804_v15 }
 0x8ae   :  { %4197 = vmatmul.mubr.msk.f32.vlgmr.msra.gmra.mrb[16].mxu0 %vm88_vm0, %v1106_v12  ;;  %4202 = vmatmul.mubr.msk.f32.vlgmr.msra.gmra.mrb[10].mxu1 %vm88_vm0, %v1260_v16 }
 0x8af   :  { %4205 = vmatpush3.xpose.msk.msra.mxu0 %vm88_vm0, %v1340_v11  ;;  %4206 = vmatprep.mubr.msk.f32.mxu0 %vm4805_vm2, %v4804_v15 }
 0x8b0   :  { %4214 = vmatprep.subr.mxu0 %v4804_v15  ;;  %4211 = vmatprep.mubr.msk.f32.mxu1 %vm4805_vm2, %v4804_v15 }
 0x8b2   :  { %4207 = vmatmul.mubr.msk.f32.vlgmr.msra.gmra.mrb[18].mxu0 %vm88_vm0, %v1338_v20 }
 0x8b3   :  { %4216 = vmatprep.mubr.msk.f32.mxu0 %vm4805_vm2, %v4804_v15 }
 0x97d   :  { %v1179_v21 = vpop.f32.mrb[8].mxu1 }
 0x97e   :  { %v4193_v22 = vpop.f32.mrb[9].mxu1 }
 0x981   :  { %v1255_v25 = vpop.f32.mrb[16].mxu0  ;;  %v1333_v26 = vpop.f32.mrb[10].mxu1 }
 0x982   :  { %v1415_v27 = vmul.f32 0.35355338, %v1333_v26  ;;  %v4198_v28 = vpop.f32.mrb[17].mxu0  ;;  %v4203_v29 = vpop.f32.mrb[11].mxu1 }
 0x984   :  { %v1417_v30 = vsel %vm88_vm0, %v1415_v27, -inf }
 0x985   :  { %v1411_v31 = vpop.f32.mrb[18].mxu0  ;;  %1418 = vmax.xlane.f32.xlu0 %v1417_v30 }
 0x986   :  { %v1416_v32 = vmul.f32 0.35355338, %v1411_v31  ;;  %v4208_v33 = vpop.f32.mrb[19].mxu0 }
 0x988   :  { %v1420_v34 = vsel %vm88_vm0, %v1416_v32, -inf }
 0x989   :  { %1421 = vmax.xlane.f32.xlu1 %v1420_v34 }
 0x99a   :  { %1439 = vrot.lane.b32.xlu1 %v4973_v23, %s4816_s24 }
 0x99e   :  { %4579 = vrot.lane.b32.xlu1 %v4578_v35, %s4817_s25 }
 0x9a2   :  { %4584 = vrot.lane.b32.xlu1 %v4583_v36, %s4817_s25 }
 0x9a6   :  { %1595 = vrot.lane.b32.xlu1 %v5067_v41, %s4799_s27 }
 0x9aa   :  { %1603 = vrot.lane.b32.xlu1 %v1255_v25, %s4802_s30 }
 0xa12   :  { %v1419_v37 = vpop.xlane.xlu0 %1418 }
 0xa13   :  { %v1423_v38 = vsub.f32 %v1415_v27, %v1419_v37 }
 0xa15   :  { %v1425_v40 = vmul.f32 1.442695, %v1423_v38 }
 0xa16   :  { %v1422_v23 = vpop.xlane.xlu1 %1421 }
 0xa17   :  { %4622 = vpow2.f32 %v1425_v40  ;;  %v1424_v42 = vsub.f32 %v1416_v32, %v1422_v23  ;;  %v171_v40 = vld [vmem:[#allocation7 + $0x8] sm:$0xff]  ;;  %v173_v23 = vld [vmem:[#allocation7 + $0x18] sm:$0xff] }
 0xa19   :  { %v1427_v3 = vmul.f32 1.442695, %v1424_v42  ;;  %v4451_v42 = vpack.c.bf16 %v173_v23, %v171_v40 }
 0xa1a   :  { %v1440_v4 = vpop.permute.xlu1 %1439 }
 0xa1b   :  { %4624 = vpow2.f32 %v1427_v3  ;;  %4210 = vmatpush3.msra.mxu1 %v1440_v4  ;;  %v175_v3 = vld [vmem:[#allocation7 + $0x28] sm:$0xff]  ;;  %v177_v4 = vld [vmem:[#allocation7 + $0x38] sm:$0xff] }
 0xa1e   :  { %v4580_v43 = vpop.permute.xlu1 %4579 }
 0xa1f   :  { %v4582_v44 = vunpack.i.h.bf16 %v4580_v43  ;;  %v4581_v6 = vunpack.i.l.bf16 %v4580_v43  ;;  %v4455_v43 = vpack.c.bf16 %v177_v4, %v175_v3 }
 0xa21   :  { %v4623_v7 = vpop.eup %4622  ;;  %v4443_v45 = vpack.c.bf16 %v4582_v44, %v4581_v6  ;;  %v1852_v44 = vld [vmem:[#allocation8] sm:$0xff]  ;;  %v1853_v6 = vld [vmem:[#allocation8 + $0x8] sm:$0xff] }
 0xa22   :  { %v1429_v46 = vsel %vm88_vm0, %v4623_v7, 0.0  ;;  %v4585_v50 = vpop.permute.xlu1 %4584 }
 0xa23   :  { %1430 = vadd.xlane.f32.xlu0 %v1429_v46  ;;  %4444 = vmatprep.subr.bf16.mxu1 %v4443_v45  ;;  %v4587_v51 = vunpack.i.h.bf16 %v4585_v50  ;;  %v4586_v52 = vunpack.i.l.bf16 %v4585_v50  ;;  %v1855_v46 = vld [vmem:[#allocation8 + $0x18] sm:$0xff]  ;;  %v1858_v50 = vld [vmem:[#allocation8 + $0x30] sm:$0xff] }
 0xa25   :  { %v4625_v41 = vpop.eup %4624  ;;  %v4447_v55 = vpack.c.bf16 %v4587_v51, %v4586_v52  ;;  %v1859_v51 = vld [vmem:[#allocation8 + $0x38] sm:$0xff] }
 0xa26   :  { %v1432_v47 = vsel %vm88_vm0, %v4625_v41, 0.0  ;;  %v1596_v0 = vpop.permute.xlu1 %1595  ;;  %v4471_v52 = vpack.c.bf16 %v1859_v51, %v1858_v50 }
 0xa27   :  { %1433 = vadd.xlane.f32.xlu0 %v1432_v47  ;;  %v1616_v11 = vsel %vm88_vm0, %v5029_v59, %v1596_v0  ;;  %v1856_v47 = vld [vmem:[#allocation8 + $0x20] sm:$0xff] }
 0xa2a   :  { %v1604_v5 = vpop.permute.xlu1 %1603 }
 0xa2b   :  { %v1619_v12 = vsel %vm1617_vm4, %v1616_v11, %v1604_v5 }
 0xa3d   :  { %1515 = vrot.lane.b32.xlu0 %v4977_v24, %s4816_s24 }
 0xa41   :  { %1593 = vrot.lane.b32.xlu0 %v5065_v39, %s4799_s27 }
 0xa45   :  { %1601 = vrot.lane.b32.xlu0 %v1179_v21, %s4802_s30 }
 0xab0   :  { %v1431_v48 = vpop.xlane.xlu0 %1430 }
 0xab1   :  { %4626 = vrcp.f32 %v1431_v48  ;;  %v1857_v48 = vld [vmem:[#allocation8 + $0x28] sm:$0xff] }
 0xab4   :  { %v1434_v49 = vpop.xlane.xlu0 %1433 }
 0xab5   :  { %4628 = vrcp.f32 %v1434_v49  ;;  %v4467_v49 = vpack.c.bf16 %v1857_v48, %v1856_v47 }
 0xab8   :  { %v1516_v53 = vpop.permute.xlu0 %1515 }
 0xab9   :  { %4215 = vmatpush3.msra.mxu0 %v1516_v53  ;;  %v1860_v53 = vld [vmem:[#allocation8 + $0x40] sm:$0xff] }
 0xaba   :  { %4452 = vmatprep.subr.bf16.mxu0 %v4451_v42 }
 0xabb   :  { %v4627_v54 = vpop.eup %4626 }
 0xabc   :  { %v1436_v56 = vmul.f32 %v4627_v54, %v4623_v7  ;;  %v1594_v63 = vpop.permute.xlu0 %1593  ;;  %v1854_v7 = vld [vmem:[#allocation8 + $0x10] sm:$0xff]  ;;  %v1861_v54 = vld [vmem:[#allocation8 + $0x48] sm:$0xff] }
 0xabd   :  { %v1615_v2 = vsel %vm88_vm0, %v5027_v57, %v1594_v63  ;;  %v1625_v57 = vsub.s32 1, %v4958_v17 }
 0xabe   :  { %4212 = vmatmul.mubr.msk.f32.vlgmr.msra.gmra.mrb[12].mxu1 %vm88_vm0, %v1436_v56  ;;  %v1862_v56 = vld [vmem:[#allocation8 + $0x50] sm:$0xff] }
 0xabf   :  { %v4629_v24 = vpop.eup %4628  ;;  %4446 = vmatpush3.bf16.msra.mxu1 %v4443_v45  ;;  %v1626_v21 = vrot.slane %v4968_v19, %v1625_v57  ;;  %v4459_v45 = vpack.c.bf16 %v1853_v6, %v1852_v44 }
 0xac0   :  { %v1438_v58 = vmul.f32 %v4629_v24, %v4625_v41  ;;  %4448 = vmatprep.subr.bf16.mxu1 %v4447_v55  ;;  %v1602_v1 = vpop.permute.xlu0 %1601  ;;  %v4463_v41 = vpack.c.bf16 %v1855_v46, %v1854_v7  ;;  %v1863_v24 = vld [vmem:[#allocation8 + $0x58] sm:$0xff] }
 0xac1   :  { %v1618_v8 = vsel %vm1617_vm4, %v1615_v2, %v1602_v1 }
 0xac2   :  { %4217 = vmatmul.mubr.msk.f32.vlgmr.msra.gmra.mrb[20].mxu0 %vm88_vm0, %v1438_v58  ;;  %v4479_v58 = vpack.c.bf16 %v1863_v24, %v1862_v56  ;;  %v5190_v56 = vld [vmem:[#allocation7 + $0x60] sm:$0xff]  ;;  %v5192_v24 = vld [vmem:[#allocation7 + $0x70] sm:$0xff] }
 0xac3   :  { %4450 = vmatpush3.bf16.msra.mxu1 %v4447_v55  ;;  %4454 = vmatpush3.bf16.msra.mxu0 %v4451_v42  ;;  %v4475_v55 = vpack.c.bf16 %v1861_v54, %v1860_v53  ;;  %v5184_v53 = vld [vmem:[#allocation7 + $0x50] sm:$0xff] }
 0xac4   :  { %4456 = vmatprep.subr.bf16.mxu0 %v4455_v43  ;;  %4460 = vmatprep.subr.bf16.mxu1 %v4459_v45 }
 0xac7   :  { %4458 = vmatpush3.bf16.msra.mxu0 %v4455_v43 }
 0xb91   :  { %v1511_v39 = vpop.f32.mrb[12].mxu1 }
 0xb92   :  { %1609 = vrot.lane.b32.xlu0 %v1511_v39, %s4818_s26  ;;  %v4213_v60 = vpop.f32.mrb[13].mxu1  ;;  %v1864_v39 = vld [vmem:[#allocation8 + $0x60] sm:$0xff] }
 0xb93   :  { %v1865_v60 = vld [vmem:[#allocation8 + $0x68] sm:$0xff] }
 0xb95   :  { %v1587_v61 = vpop.f32.mrb[20].mxu0 }
 0xb96   :  { %1611 = vrot.lane.b32.xlu1 %v1587_v61, %s4818_s26  ;;  %v4218_v62 = vpop.f32.mrb[21].mxu0  ;;  %v4483_v61 = vpack.c.bf16 %v1865_v60, %v1864_v39  ;;  %v4495_v39 = vpack.c.bf16 %v5192_v24, %v5190_v56 }
 0xc04   :  { %v1610_v9 = vpop.permute.xlu0 %1609 }
 0xc05   :  { %v1621_v10 = vsel %vm1620_vm3, %v1618_v8, %v1610_v9  ;;  %v1755_v8 = vsub.s32 2, %v4958_v17  ;;  %v1761_v9 = vsub.s32 3, %v4958_v17 }
 0xc06   :  { %4227 = vmatprep.mubr.msk.f32.mxu1 %vm183_vm1, %v1621_v10 }
 0xc07   :  { %v1756_v10 = vrot.slane %v4968_v19, %v1755_v8 }
 0xc08   :  { %v1612_v16 = vpop.permute.xlu1 %1611 }
 0xc09   :  { %v1622_v20 = vsel %vm1620_vm3, %v1619_v12, %v1612_v16  ;;  %v1762_v16 = vrot.slane %v4968_v19, %v1761_v9 }
 0xc0a   :  { %4228 = vmatmul.mubr.msk.f32.vlgmr.msra.gmra.mrb[14].mxu1 %vm183_vm1, %v1622_v20 }
 0xc0b   :  { %4462 = vmatpush3.bf16.msra.mxu1 %v4459_v45 }
 0xc0c   :  { %4464 = vmatprep.subr.bf16.mxu1 %v4463_v41 }
 0xc0f   :  { %4466 = vmatpush3.bf16.msra.mxu1 %v4463_v41 }
 0xc10   :  { %4468 = vmatprep.subr.bf16.mxu1 %v4467_v49 }
 0xc13   :  { %4470 = vmatpush3.bf16.msra.mxu1 %v4467_v49 }
 0xc14   :  { %4472 = vmatprep.subr.bf16.mxu1 %v4471_v52 }
 0xc17   :  { %4474 = vmatpush3.bf16.msra.mxu1 %v4471_v52  ;;  %v5182_v52 = vld [vmem:[#allocation7 + $0x40] sm:$0xff] }
 0xc18   :  { %4476 = vmatprep.subr.bf16.mxu1 %v4475_v55  ;;  %v4491_v54 = vpack.c.bf16 %v5184_v53, %v5182_v52 }
 0xc1a   :  { %4492 = vmatprep.subr.bf16.mxu0 %v4491_v54 }
 0xc1b   :  { %4478 = vmatpush3.bf16.msra.mxu1 %v4475_v55  ;;  %v4588_v55 = vpack.i.bf16 %v5184_v53, %v5182_v52 }
 0xc1c   :  { %4480 = vmatprep.subr.bf16.mxu1 %v4479_v58 }
 0xc1f   :  { %4482 = vmatpush3.bf16.msra.mxu1 %v4479_v58  ;;  %v4593_v58 = vpack.i.bf16 %v5192_v24, %v5190_v56 }
 0xc20   :  { %4484 = vmatprep.subr.bf16.mxu1 %v4483_v61 }
 0xc23   :  { %4486 = vmatpush3.bf16.msra.mxu1 %v4483_v61 }
 0xcdd   :  { %v4229_v22 = vpop.f32.mrb[14].mxu1 }
 0xcde   :  { %v1721_v25 = vadd.f32 %v4229_v22, %v1626_v21  ;;  %v1715_v26 = vpop.f32.mrb[15].mxu1 }
 0xcdf   :  { %v1716_v27 = vadd.f32 %v1715_v26, %v1626_v21 }
 0xce0   :  { %v1725_v28 = vadd.f32 %v1721_v25, %v4950_v14 }
 0xce1   :  { %v1724_v59 = vadd.f32 %v1716_v27, %v4948_v13 }
 0xce2   :  { %v1729_v29 = vsel %vm183_vm1, %v1725_v28, 0.0 }
 0xce3   :  { %1730 = vadd.xlane.f32.xlu1 %v1729_v29  ;;  %v1726_v30 = vsel %vm183_vm1, %v1724_v59, 0.0 }
 0xce4   :  { %1727 = vadd.xlane.f32.xlu0 %v1726_v30  ;;  %v1767_v30 = vsub.s32 4, %v4958_v17 }
 0xd70   :  { %v1731_v31 = vpop.xlane.xlu1 %1730 }
 0xd71   :  { %v1734_v32 = vmul.f32 0.03125, %v1731_v31  ;;  %v1728_v33 = vpop.xlane.xlu0 %1727  ;;  %v1768_v31 = vrot.slane %v4968_v19, %v1767_v30 }
 0xd72   :  { %v1733_v34 = vmul.f32 0.03125, %v1728_v33 }
 0xd73   :  { %v5145_v35 = vsub.f32 %v1725_v28, %v1734_v32  ;;  %v1866_v28 = vld [vmem:[#allocation8 + $0x70] sm:$0xff] }
 0xd74   :  { %v5147_v36 = vsub.f32 %v1724_v59, %v1733_v34  ;;  %v1867_v59 = vld [vmem:[#allocation8 + $0x78] sm:$0xff] }
 0xd75   :  { %v1738_v13 = vmul.f32 %v5145_v35, %v5145_v35  ;;  %v4487_v29 = vpack.c.bf16 %v1867_v59, %v1866_v28  ;;  %v5220_v28 = vld [vmem:[%s5466_s7 + $0x8] sm:$0xff] }
 0xd76   :  { %v1737_v37 = vmul.f32 %v5147_v36, %v5147_v36 }
 0xd77   :  { %v1742_v38 = vsel %vm183_vm1, %v1738_v13, 0.0  ;;  %4488 = vmatprep.subr.bf16.mxu1 %v4487_v29 }
 0xd78   :  { %v1739_v14 = vsel %vm183_vm1, %v1737_v37, 0.0  ;;  %4490 = vmatpush3.bf16.msra.mxu1 %v4487_v29 }
 0xd79   :  { %1740 = vadd.xlane.f32.xlu0 %v1739_v14  ;;  %4317 = vmatprep.subr.mxu1 %v4804_v15  ;;  %v1870_v14 = vsub.s32 5, %v4958_v17 }
 0xd7b   :  { %v1871_v13 = vrot.slane %v4968_v19, %v1870_v14 }
 0xd7d   :  { %1743 = vadd.xlane.f32.xlu0 %v1742_v38 }
 0xe06   :  { %v1741_v62 = vpop.xlane.xlu0 %1740 }
 0xe07   :  { %v1745_v63 = vmul.f32 0.03125, %v1741_v62 }
 0xe09   :  { %v1747_v0 = vadd.f32 1e-05, %v1745_v63 }
 0xe0a   :  { %v1744_v1 = vpop.xlane.xlu0 %1743 }
 0xe0b   :  { %4630 = vrsqrt.f32 %v1747_v0  ;;  %v1746_v2 = vmul.f32 0.03125, %v1744_v1 }
 0xe0d   :  { %v1748_v5 = vadd.f32 1e-05, %v1746_v2  ;;  %v1977_v2 = vsub.s32 6, %v4958_v17 }
 0xe0f   :  { %4632 = vrsqrt.f32 %v1748_v5  ;;  %v1983_v5 = vsub.s32 7, %v4958_v17 }
 0xe15   :  { %v4631_v11 = vpop.eup %4630 }
 0xe16   :  { %v1751_v12 = vmul.f32 %v4631_v11, %v5147_v36 }
 0xe18   :  { %v1757_v20 = vmul.f32 %v1756_v10, %v1751_v12 }
 0xe19   :  { %v4633_v21 = vpop.eup %4632 }
 0xe1a   :  { %v1752_v22 = vmul.f32 %v4633_v21, %v5145_v35  ;;  %v1763_v25 = vadd.f32 %v1762_v16, %v1757_v20  ;;  %v1984_v21 = vrot.slane %v4968_v19, %v1983_v5 }
 0xe1c   :  { %v1758_v26 = vmul.f32 %v1756_v10, %v1752_v22  ;;  %4238 = vmatprep.mubr.msk.f32.mxu0 %vm183_vm1, %v1763_v25  ;;  %v1978_v10 = vrot.slane %v4968_v19, %v1977_v2  ;;  %v2001_v19 = vrot.slane %v5220_v28, %v181_v18 }
 0xe1e   :  { %v1764_v27 = vadd.f32 %v1762_v16, %v1758_v26 }
 0xe20   :  { %4239 = vmatmul.mubr.msk.f32.vlgmr.msra.gmra.mrb[22].mxu0 %vm183_vm1, %v1764_v27 }
 0xe21   :  { %4494 = vmatpush3.bf16.msra.mxu0 %v4491_v54 }
 0xe22   :  { %4496 = vmatprep.subr.bf16.mxu0 %v4495_v39 }
 0xe25   :  { %4498 = vmatpush3.bf16.msra.mxu0 %v4495_v39 }
 0xe26   :  { %4287 = vmatprep.subr.mxu0 %v4804_v15 }
 0xef3   :  { %v4240_v32 = vpop.f32.mrb[22].mxu0 }
 0xef4   :  { %v1847_v33 = vadd.f32 %v4240_v32, %v1768_v31  ;;  %v1841_v34 = vpop.f32.mrb[23].mxu0 }
 0xef5   :  { %v1842_v35 = vadd.f32 %v1841_v34, %v1768_v31 }
 0xef6   :  { %v1851_v37 = vmax.f32 %v1847_v33, 0.0 }
 0xef7   :  { %v1850_v36 = vmax.f32 %v1842_v35, 0.0 }
 0xef9   :  { %4273 = vmatprep.mubr.f32.mxu1 %v1850_v36 }
 0xefa   :  { %4274 = vmatmul.mubr.f32.vlgmr.msra.gmra.mrb[16].mxu1 %v1851_v37 }
 0xefb   :  { %4319 = vmatprep.mubr.msk.f32.mxu1 %vm4805_vm2, %v4804_v15 }
 0xfcd   :  { %v4275_v38 = vpop.f32.mrb[16].mxu1 }
 0xfce   :  { %v1944_v40 = vadd.f32 %v4275_v38, %v1871_v13  ;;  %v1938_v23 = vpop.f32.mrb[17].mxu1 }
 0xfcf   :  { %v1939_v42 = vadd.f32 %v1938_v23, %v1871_v13 }
 0xfd0   :  { %v1948_v3 = vadd.f32 %v1944_v40, %v1764_v27 }
 0xfd1   :  { %v1947_v4 = vadd.f32 %v1939_v42, %v1763_v25 }
 0xfd2   :  { %v1952_v43 = vsel %vm183_vm1, %v1948_v3, 0.0 }
 0xfd3   :  { %1953 = vadd.xlane.f32.xlu0 %v1952_v43  ;;  %v1949_v44 = vsel %vm183_vm1, %v1947_v4, 0.0 }
 0xfd4   :  { %1950 = vadd.xlane.f32.xlu1 %v1949_v44 }
0x1060   :  { %v1954_v6 = vpop.xlane.xlu0 %1953 }
0x1061   :  { %v1956_v7 = vmul.f32 0.03125, %v1954_v6  ;;  %v1951_v45 = vpop.xlane.xlu1 %1950 }
0x1062   :  { %v1955_v46 = vmul.f32 0.03125, %v1951_v45 }
0x1063   :  { %v1958_v41 = vsub.f32 %v1948_v3, %v1956_v7 }
0x1064   :  { %v1957_v47 = vsub.f32 %v1947_v4, %v1955_v46 }
0x1065   :  { %v1960_v48 = vmul.f32 %v1958_v41, %v1958_v41 }
0x1066   :  { %v1959_v49 = vmul.f32 %v1957_v47, %v1957_v47 }
0x1067   :  { %v1964_v50 = vsel %vm183_vm1, %v1960_v48, 0.0 }
0x1068   :  { %1965 = vadd.xlane.f32.xlu0 %v1964_v50  ;;  %v1961_v51 = vsel %vm183_vm1, %v1959_v49, 0.0 }
0x1069   :  { %1962 = vadd.xlane.f32.xlu1 %v1961_v51 }
0x10f5   :  { %v1966_v60 = vpop.xlane.xlu0 %1965 }
0x10f6   :  { %v1968_v61 = vmul.f32 0.03125, %v1966_v60  ;;  %v1963_v62 = vpop.xlane.xlu1 %1962 }
0x10f7   :  { %v1967_v63 = vmul.f32 0.03125, %v1963_v62 }
0x10f8   :  { %v1970_v0 = vadd.f32 1e-05, %v1968_v61 }
0x10f9   :  { %v1969_v1 = vadd.f32 1e-05, %v1967_v63 }
0x10fa   :  { %4634 = vrsqrt.f32 %v1970_v0 }
0x10fb   :  { %4636 = vrsqrt.f32 %v1969_v1 }
0x1104   :  { %v4635_v11 = vpop.eup %4634 }
0x1105   :  { %v4637_v12 = vpop.eup %4636  ;;  %v1974_v16 = vmul.f32 %v4635_v11, %v1958_v41 }
0x1106   :  { %v1973_v20 = vmul.f32 %v4637_v12, %v1957_v47 }
0x1107   :  { %v1980_v22 = vmul.f32 %v1978_v10, %v1974_v16 }
0x1108   :  { %v1979_v25 = vmul.f32 %v1978_v10, %v1973_v20 }
0x1109   :  { %v5209_v27 = vadd.f32 %v1984_v21, %v1980_v22 }
0x110a   :  { %v5207_v26 = vadd.f32 %v1984_v21, %v1979_v25 }
0x110c   :  { %4284 = vmatprep.mubr.msk.f32.mxu0 %vm183_vm1, %v5207_v26 }
0x110d   :  { %4285 = vmatmul.mubr.msk.f32.vlgmr.msra.gmra.mrb[24].mxu0 %vm183_vm1, %v5209_v27 }
0x110e   :  { %4289 = vmatprep.mubr.msk.f32.mxu0 %vm4805_vm2, %v4804_v15 }
0x11e0   :  { %v4286_v59 = vpop.f32.mrb[24].mxu0 }
0x11e1   :  { %v5225_v29 = vadd.f32 %v4286_v59, %v2001_v19  ;;  %v2074_v31 = vpop.f32.mrb[25].mxu0 }
0x11e2   :  { %v5227_v32 = vadd.f32 %v2074_v31, %v2001_v19 }
0x11e3   :  { %2161 = vrot.lane.b32.xlu0 %v5225_v29, %s4806_s15 }
0x11e4   :  { %2084 = vrot.lane.b32.xlu1 %v5227_v32, %s4806_s15 }
0x1255   :  { %v2162_v34 = vpop.permute.xlu0 %2161 }
0x1256   :  { %v2085_v33 = vpop.permute.xlu1 %2084 }
0x1257   :  { %4288 = vmatpush3.xpose.msk.msra.mxu0 %vm88_vm0, %v2085_v33 }
0x1258   :  { %4292 = vmatprep.subr.mxu0 %v4804_v15 }
0x125a   :  { %4290 = vmatmul.mubr.msk.f32.vlgmr.msra.gmra.mrb[26].mxu0 %vm88_vm0, %v5227_v32 }
0x125b   :  { %4293 = vmatpush3.xpose.msk.msra.mxu0 %vm88_vm0, %v2162_v34  ;;  %4294 = vmatprep.mubr.msk.f32.mxu0 %vm4805_vm2, %v4804_v15 }
0x125c   :  { %4297 = vmatprep.subr.mxu0 %v4804_v15 }
0x125e   :  { %4295 = vmatmul.mubr.msk.f32.vlgmr.msra.gmra.mrb[28].mxu0 %vm88_vm0, %v5225_v29 }
0x125f   :  { %4299 = vmatprep.mubr.msk.f32.mxu0 %vm4805_vm2, %v4804_v15 }
0x132d   :  { %v2156_v18 = vpop.f32.mrb[26].mxu0 }
0x132e   :  { %v2237_v35 = vmul.f32 0.35355338, %v2156_v18  ;;  %v4291_v36 = vpop.f32.mrb[27].mxu0 }
0x1330   :  { %v2239_v37 = vsel %vm88_vm0, %v2237_v35, -inf }
0x1331   :  { %2240 = vmax.xlane.f32.xlu1 %v2239_v37  ;;  %v2233_v13 = vpop.f32.mrb[28].mxu0 }
0x1332   :  { %v2238_v38 = vmul.f32 0.35355338, %v2233_v13  ;;  %v4296_v40 = vpop.f32.mrb[29].mxu0 }
0x1334   :  { %v2242_v23 = vsel %vm88_vm0, %v2238_v38, -inf }
0x1335   :  { %2243 = vmax.xlane.f32.xlu0 %v2242_v23 }
0x1342   :  { %2261 = vrot.lane.b32.xlu1 %v5227_v32, %s4807_s16 }
0x13be   :  { %v2241_v42 = vpop.xlane.xlu1 %2240 }
0x13bf   :  { %v2245_v3 = vsub.f32 %v2237_v35, %v2241_v42 }
0x13c1   :  { %v2247_v4 = vmul.f32 1.442695, %v2245_v3 }
0x13c2   :  { %v2262_v43 = vpop.permute.xlu1 %2261  ;;  %v2244_v44 = vpop.xlane.xlu0 %2243 }
0x13c3   :  { %4638 = vpow2.f32 %v2247_v4  ;;  %v2246_v6 = vsub.f32 %v2238_v38, %v2244_v44  ;;  %4298 = vmatpush3.msra.mxu0 %v2262_v43 }
0x13c4   :  { %4302 = vmatprep.subr.mxu0 %v4804_v15 }
0x13c5   :  { %v2249_v7 = vmul.f32 1.442695, %v2246_v6 }
0x13c7   :  { %4640 = vpow2.f32 %v2249_v7 }
0x13cd   :  { %v4639_v45 = vpop.eup %4638 }
0x13ce   :  { %v2251_v46 = vsel %vm88_vm0, %v4639_v45, 0.0 }
0x13cf   :  { %2252 = vadd.xlane.f32.xlu1 %v2251_v46 }
0x13d1   :  { %v4641_v41 = vpop.eup %4640 }
0x13d2   :  { %v2254_v47 = vsel %vm88_vm0, %v4641_v41, 0.0 }
0x13d3   :  { %2255 = vadd.xlane.f32.xlu0 %v2254_v47 }
0x13e0   :  { %2415 = vrot.lane.b32.xlu1 %v5227_v32, %s4808_s17 }
0x13e4   :  { %2413 = vrot.lane.b32.xlu1 %v5227_v32, %s4809_s18 }
0x13e8   :  { %2491 = vrot.lane.b32.xlu1 %v5225_v29, %s4809_s18 }
0x13e9   :  { %2337 = vrot.lane.b32.xlu0 %v5225_v29, %s4807_s16 }
0x13ed   :  { %2493 = vrot.lane.b32.xlu0 %v5225_v29, %s4808_s17 }
0x145c   :  { %v2253_v48 = vpop.xlane.xlu1 %2252 }
0x145d   :  { %4642 = vrcp.f32 %v2253_v48 }
0x1460   :  { %v2256_v49 = vpop.xlane.xlu0 %2255  ;;  %v2416_v60 = vpop.permute.xlu1 %2415 }
0x1461   :  { %4644 = vrcp.f32 %v2256_v49 }
0x1464   :  { %v2338_v54 = vpop.permute.xlu0 %2337  ;;  %v2414_v62 = vpop.permute.xlu1 %2413 }
0x1467   :  { %v4643_v50 = vpop.eup %4642 }
0x1468   :  { %v2258_v51 = vmul.f32 %v4643_v50, %v4639_v45  ;;  %v2494_v63 = vpop.permute.xlu0 %2493  ;;  %v2492_v0 = vpop.permute.xlu1 %2491 }
0x146a   :  { %4300 = vmatmul.mubr.msk.f32.vlgmr.msra.gmra.mrb[30].mxu0 %vm88_vm0, %v2258_v51 }
0x146b   :  { %v4645_v39 = vpop.eup %4644  ;;  %4303 = vmatpush3.msra.mxu0 %v2338_v54  ;;  %4304 = vmatprep.mubr.msk.f32.mxu0 %vm4805_vm2, %v4804_v15 }
0x146c   :  { %v2260_v61 = vmul.f32 %v4645_v39, %v4641_v41  ;;  %4307 = vmatprep.subr.mxu0 %v4804_v15 }
0x146e   :  { %4305 = vmatmul.mubr.msk.f32.vlgmr.msra.gmra.mrb[32].mxu0 %vm88_vm0, %v2260_v61 }
0x146f   :  { %4309 = vmatprep.mubr.msk.f32.mxu0 %vm4805_vm2, %v4804_v15 }
0x1472   :  { %4308 = vmatpush3.xpose.msk.msra.mxu0 %vm88_vm0, %v2416_v60 }
0x1473   :  { %4312 = vmatprep.subr.mxu0 %v4804_v15 }
0x1475   :  { %4310 = vmatmul.mubr.msk.f32.vlgmr.msra.gmra.mrb[34].mxu0 %vm88_vm0, %v2414_v62 }
0x1476   :  { %4313 = vmatpush3.xpose.msk.msra.mxu0 %vm88_vm0, %v2494_v63  ;;  %4314 = vmatprep.mubr.msk.f32.mxu0 %vm4805_vm2, %v4804_v15 }
0x1477   :  { %4322 = vmatprep.subr.mxu0 %v4804_v15 }
0x1479   :  { %4315 = vmatmul.mubr.msk.f32.vlgmr.msra.gmra.mrb[36].mxu0 %vm88_vm0, %v2492_v0 }
0x147a   :  { %4324 = vmatprep.mubr.msk.f32.mxu0 %vm4805_vm2, %v4804_v15 }
0x153d   :  { %v5279_v1 = vpop.f32.mrb[30].mxu0 }
0x153e   :  { %v4301_v10 = vpop.f32.mrb[31].mxu0 }
0x1541   :  { %v5281_v11 = vpop.f32.mrb[32].mxu0 }
0x1542   :  { %v4306_v12 = vpop.f32.mrb[33].mxu0 }
0x1548   :  { %v2487_v16 = vpop.f32.mrb[34].mxu0 }
0x1549   :  { %v2569_v20 = vmul.f32 0.35355338, %v2487_v16  ;;  %v4311_v21 = vpop.f32.mrb[35].mxu0 }
0x154b   :  { %v2571_v22 = vsel %vm88_vm0, %v2569_v20, -inf }
0x154c   :  { %2572 = vmax.xlane.f32.xlu0 %v2571_v22  ;;  %v2565_v25 = vpop.f32.mrb[36].mxu0 }
0x154d   :  { %v2570_v19 = vmul.f32 0.35355338, %v2565_v25  ;;  %v4316_v59 = vpop.f32.mrb[37].mxu0 }
0x154f   :  { %v2574_v31 = vsel %vm88_vm0, %v2570_v19, -inf }
0x1550   :  { %2575 = vmax.xlane.f32.xlu1 %v2574_v31 }
0x1561   :  { %2593 = vrot.lane.b32.xlu1 %v5227_v32, %s4810_s0 }
0x1562   :  { %2669 = vrot.lane.b32.xlu0 %v5225_v29, %s4810_s0 }
0x1565   :  { %2747 = vrot.lane.b32.xlu1 %v5227_v32, %s4811_s19 }
0x1569   :  { %2825 = vrot.lane.b32.xlu1 %v5225_v29, %s4811_s19 }
0x156d   :  { %2823 = vrot.lane.b32.xlu1 %v5225_v29, %s4812_s20 }
0x15d9   :  { %v2573_v33 = vpop.xlane.xlu0 %2572 }
0x15da   :  { %v2577_v34 = vsub.f32 %v2569_v20, %v2573_v33 }
0x15dc   :  { %v2579_v18 = vmul.f32 1.442695, %v2577_v34 }
0x15dd   :  { %v2670_v35 = vpop.permute.xlu0 %2669  ;;  %v2576_v36 = vpop.xlane.xlu1 %2575 }
0x15de   :  { %4646 = vpow2.f32 %v2579_v18  ;;  %v2578_v37 = vsub.f32 %v2570_v19, %v2576_v36  ;;  %4323 = vmatpush3.msra.mxu0 %v2670_v35 }
0x15df   :  { %4332 = vmatprep.subr.mxu0 %v4804_v15 }
0x15e0   :  { %v2581_v13 = vmul.f32 1.442695, %v2578_v37 }
0x15e1   :  { %v2594_v38 = vpop.permute.xlu1 %2593 }
0x15e2   :  { %4648 = vpow2.f32 %v2581_v13  ;;  %4318 = vmatpush3.msra.mxu1 %v2594_v38 }
0x15e3   :  { %4327 = vmatprep.subr.mxu1 %v4804_v15 }
0x15e5   :  { %v2748_v44 = vpop.permute.xlu1 %2747 }
0x15e8   :  { %v4647_v40 = vpop.eup %4646 }
0x15e9   :  { %v2583_v23 = vsel %vm88_vm0, %v4647_v40, 0.0  ;;  %v2826_v46 = vpop.permute.xlu1 %2825 }
0x15ea   :  { %2584 = vadd.xlane.f32.xlu0 %v2583_v23 }
0x15ec   :  { %v4649_v42 = vpop.eup %4648 }
0x15ed   :  { %v2586_v3 = vsel %vm88_vm0, %v4649_v42, 0.0  ;;  %v2824_v48 = vpop.permute.xlu1 %2823 }
0x15ee   :  { %2587 = vadd.xlane.f32.xlu0 %v2586_v3 }
0x1604   :  { %2745 = vrot.lane.b32.xlu0 %v5227_v32, %s4812_s20 }
0x1677   :  { %v2585_v4 = vpop.xlane.xlu0 %2584 }
0x1678   :  { %4650 = vrcp.f32 %v2585_v4 }
0x167b   :  { %v2588_v43 = vpop.xlane.xlu0 %2587 }
0x167c   :  { %4652 = vrcp.f32 %v2588_v43 }
0x167f   :  { %v2746_v47 = vpop.permute.xlu0 %2745 }
0x1682   :  { %v4651_v6 = vpop.eup %4650 }
0x1683   :  { %v2590_v7 = vmul.f32 %v4651_v6, %v4647_v40 }
0x1685   :  { %4320 = vmatmul.mubr.msk.f32.vlgmr.msra.gmra.mrb[18].mxu1 %vm88_vm0, %v2590_v7 }
0x1686   :  { %v4653_v45 = vpop.eup %4652  ;;  %4328 = vmatpush3.xpose.msk.msra.mxu1 %vm88_vm0, %v2748_v44  ;;  %4329 = vmatprep.mubr.msk.f32.mxu1 %vm4805_vm2, %v4804_v15 }
0x1687   :  { %v2592_v41 = vmul.f32 %v4653_v45, %v4649_v42  ;;  %4337 = vmatprep.subr.mxu1 %v4804_v15 }
0x1689   :  { %4325 = vmatmul.mubr.msk.f32.vlgmr.msra.gmra.mrb[38].mxu0 %vm88_vm0, %v2592_v41  ;;  %4330 = vmatmul.mubr.msk.f32.vlgmr.msra.gmra.mrb[20].mxu1 %vm88_vm0, %v2746_v47 }
0x168a   :  { %4333 = vmatpush3.xpose.msk.msra.mxu0 %vm88_vm0, %v2826_v46  ;;  %4334 = vmatprep.mubr.msk.f32.mxu0 %vm4805_vm2, %v4804_v15 }
0x168b   :  { %4342 = vmatprep.subr.mxu0 %v4804_v15  ;;  %4339 = vmatprep.mubr.msk.f32.mxu1 %vm4805_vm2, %v4804_v15 }
0x168d   :  { %4335 = vmatmul.mubr.msk.f32.vlgmr.msra.gmra.mrb[40].mxu0 %vm88_vm0, %v2824_v48 }
0x168e   :  { %4344 = vmatprep.mubr.msk.f32.mxu0 %vm4805_vm2, %v4804_v15 }
0x1758   :  { %v5317_v49 = vpop.f32.mrb[18].mxu1 }
0x1759   :  { %v4321_v50 = vpop.f32.mrb[19].mxu1 }
0x175c   :  { %v5319_v51 = vpop.f32.mrb[38].mxu0  ;;  %v2819_v54 = vpop.f32.mrb[20].mxu1 }
0x175d   :  { %v2901_v39 = vmul.f32 0.35355338, %v2819_v54  ;;  %v4326_v60 = vpop.f32.mrb[39].mxu0  ;;  %v4331_v61 = vpop.f32.mrb[21].mxu1 }
0x175f   :  { %v2903_v62 = vsel %vm88_vm0, %v2901_v39, -inf }
0x1760   :  { %2904 = vmax.xlane.f32.xlu0 %v2903_v62  ;;  %v2897_v63 = vpop.f32.mrb[40].mxu0 }
0x1761   :  { %v2902_v0 = vmul.f32 0.35355338, %v2897_v63  ;;  %v4336_v10 = vpop.f32.mrb[41].mxu0 }
0x1763   :  { %v2906_v12 = vsel %vm88_vm0, %v2902_v0, -inf }
0x1764   :  { %2907 = vmax.xlane.f32.xlu1 %v2906_v12 }
0x1775   :  { %2925 = vrot.lane.b32.xlu1 %v5227_v32, %s4813_s21 }
0x1776   :  { %3001 = vrot.lane.b32.xlu0 %v5225_v29, %s4813_s21 }
0x1779   :  { %3079 = vrot.lane.b32.xlu1 %v5227_v32, %s4814_s22 }
0x177d   :  { %3157 = vrot.lane.b32.xlu1 %v5225_v29, %s4814_s22 }
0x1781   :  { %3155 = vrot.lane.b32.xlu1 %v5225_v29, %s4815_s23 }
0x17ed   :  { %v2905_v16 = vpop.xlane.xlu0 %2904 }
0x17ee   :  { %v2909_v20 = vsub.f32 %v2901_v39, %v2905_v16 }
0x17f0   :  { %v2911_v21 = vmul.f32 1.442695, %v2909_v20 }
0x17f1   :  { %v3002_v22 = vpop.permute.xlu0 %3001  ;;  %v2908_v25 = vpop.xlane.xlu1 %2907 }
0x17f2   :  { %4654 = vpow2.f32 %v2911_v21  ;;  %v2910_v19 = vsub.f32 %v2902_v0, %v2908_v25  ;;  %4343 = vmatpush3.msra.mxu0 %v3002_v22 }
0x17f3   :  { %4352 = vmatprep.subr.mxu0 %v4804_v15 }
0x17f4   :  { %v2913_v59 = vmul.f32 1.442695, %v2910_v19 }
0x17f5   :  { %v2926_v31 = vpop.permute.xlu1 %2925 }
0x17f6   :  { %4656 = vpow2.f32 %v2913_v59  ;;  %4338 = vmatpush3.msra.mxu1 %v2926_v31 }
0x17f7   :  { %4347 = vmatprep.subr.mxu1 %v4804_v15 }
0x17f9   :  { %v3080_v13 = vpop.permute.xlu1 %3079 }
0x17fc   :  { %v4655_v33 = vpop.eup %4654 }
0x17fd   :  { %v2915_v34 = vsel %vm88_vm0, %v4655_v33, 0.0  ;;  %v3158_v42 = vpop.permute.xlu1 %3157 }
0x17fe   :  { %2916 = vadd.xlane.f32.xlu0 %v2915_v34 }
0x1800   :  { %v4657_v18 = vpop.eup %4656 }
0x1801   :  { %v2918_v35 = vsel %vm88_vm0, %v4657_v18, 0.0  ;;  %v3156_v43 = vpop.permute.xlu1 %3155 }
0x1802   :  { %2919 = vadd.xlane.f32.xlu0 %v2918_v35 }
0x1818   :  { %3077 = vrot.lane.b32.xlu0 %v5227_v32, %s4815_s23 }
0x188b   :  { %v2917_v36 = vpop.xlane.xlu0 %2916 }
0x188c   :  { %4658 = vrcp.f32 %v2917_v36 }
0x188f   :  { %v2920_v37 = vpop.xlane.xlu0 %2919 }
0x1890   :  { %4660 = vrcp.f32 %v2920_v37 }
0x1893   :  { %v3078_v4 = vpop.permute.xlu0 %3077 }
0x1896   :  { %v4659_v38 = vpop.eup %4658 }
0x1897   :  { %v2922_v40 = vmul.f32 %v4659_v38, %v4655_v33 }
0x1899   :  { %4340 = vmatmul.mubr.msk.f32.vlgmr.msra.gmra.mrb[22].mxu1 %vm88_vm0, %v2922_v40 }
0x189a   :  { %v4661_v23 = vpop.eup %4660  ;;  %4348 = vmatpush3.xpose.msk.msra.mxu1 %vm88_vm0, %v3080_v13  ;;  %4349 = vmatprep.mubr.msk.f32.mxu1 %vm4805_vm2, %v4804_v15 }
0x189b   :  { %v2924_v3 = vmul.f32 %v4661_v23, %v4657_v18  ;;  %4357 = vmatprep.subr.mxu1 %v4804_v15 }
0x189d   :  { %4345 = vmatmul.mubr.msk.f32.vlgmr.msra.gmra.mrb[42].mxu0 %vm88_vm0, %v2924_v3  ;;  %4350 = vmatmul.mubr.msk.f32.vlgmr.msra.gmra.mrb[24].mxu1 %vm88_vm0, %v3078_v4 }
0x189e   :  { %4353 = vmatpush3.xpose.msk.msra.mxu0 %vm88_vm0, %v3158_v42  ;;  %4354 = vmatprep.mubr.msk.f32.mxu0 %vm4805_vm2, %v4804_v15 }
0x189f   :  { %4362 = vmatprep.subr.mxu0 %v4804_v15  ;;  %4359 = vmatprep.mubr.msk.f32.mxu1 %vm4805_vm2, %v4804_v15 }
0x18a1   :  { %4355 = vmatmul.mubr.msk.f32.vlgmr.msra.gmra.mrb[44].mxu0 %vm88_vm0, %v3156_v43 }
0x18a2   :  { %4364 = vmatprep.mubr.msk.f32.mxu0 %vm4805_vm2, %v4804_v15 }
0x196c   :  { %v2997_v44 = vpop.f32.mrb[22].mxu1 }
0x196d   :  { %v4341_v6 = vpop.f32.mrb[23].mxu1 }
0x1970   :  { %v3073_v7 = vpop.f32.mrb[42].mxu0  ;;  %v3151_v45 = vpop.f32.mrb[24].mxu1 }
0x1971   :  { %v3233_v46 = vmul.f32 0.35355338, %v3151_v45  ;;  %v4346_v41 = vpop.f32.mrb[43].mxu0  ;;  %v4351_v47 = vpop.f32.mrb[25].mxu1 }
0x1973   :  { %v3235_v48 = vsel %vm88_vm0, %v3233_v46, -inf }
0x1974   :  { %3236 = vmax.xlane.f32.xlu0 %v3235_v48  ;;  %v3229_v50 = vpop.f32.mrb[44].mxu0 }
0x1975   :  { %v3234_v54 = vmul.f32 0.35355338, %v3229_v50  ;;  %v4356_v39 = vpop.f32.mrb[45].mxu0 }
0x1977   :  { %v3238_v60 = vsel %vm88_vm0, %v3234_v54, -inf }
0x1978   :  { %3239 = vmax.xlane.f32.xlu1 %v3238_v60 }
0x1989   :  { %3257 = vrot.lane.b32.xlu1 %v5227_v32, %s4816_s24 }
0x198d   :  { %4589 = vrot.lane.b32.xlu1 %v4588_v55, %s4817_s25 }
0x1991   :  { %4594 = vrot.lane.b32.xlu1 %v4593_v58, %s4817_s25 }
0x1995   :  { %3413 = vrot.lane.b32.xlu1 %v5319_v51, %s4799_s27 }
0x1999   :  { %3421 = vrot.lane.b32.xlu1 %v3073_v7, %s4802_s30 }
0x1a01   :  { %v3237_v61 = vpop.xlane.xlu0 %3236 }
0x1a02   :  { %v3241_v62 = vsub.f32 %v3233_v46, %v3237_v61 }
0x1a04   :  { %v3243_v63 = vmul.f32 1.442695, %v3241_v62 }
0x1a05   :  { %v3240_v0 = vpop.xlane.xlu1 %3239 }
0x1a06   :  { %4662 = vpow2.f32 %v3243_v63  ;;  %v3242_v32 = vsub.f32 %v3234_v54, %v3240_v0 }
0x1a08   :  { %v3245_v10 = vmul.f32 1.442695, %v3242_v32 }
0x1a09   :  { %v3258_v12 = vpop.permute.xlu1 %3257 }
0x1a0a   :  { %4664 = vpow2.f32 %v3245_v10  ;;  %4358 = vmatpush3.msra.mxu1 %v3258_v12  ;;  %v1989_v12 = vld [vmem:[#allocation7 + $0x48] sm:$0xff] }
0x1a0d   :  { %v4590_v52 = vpop.permute.xlu1 %4589 }
0x1a0e   :  { %v4592_v53 = vunpack.i.h.bf16 %v4590_v52  ;;  %v4591_v55 = vunpack.i.l.bf16 %v4590_v52  ;;  %v1991_v52 = vld [vmem:[#allocation7 + $0x58] sm:$0xff] }
0x1a10   :  { %v4663_v56 = vpop.eup %4662  ;;  %v4499_v24 = vpack.c.bf16 %v4592_v53, %v4591_v55  ;;  %v4507_v53 = vpack.c.bf16 %v1991_v52, %v1989_v12  ;;  %v1993_v55 = vld [vmem:[#allocation7 + $0x68] sm:$0xff] }
0x1a11   :  { %v3247_v58 = vsel %vm88_vm0, %v4663_v56, 0.0  ;;  %v4595_v22 = vpop.permute.xlu1 %4594 }
0x1a12   :  { %3248 = vadd.xlane.f32.xlu0 %v3247_v58  ;;  %4500 = vmatprep.subr.bf16.mxu1 %v4499_v24  ;;  %v4597_v25 = vunpack.i.h.bf16 %v4595_v22  ;;  %v4596_v19 = vunpack.i.l.bf16 %v4595_v22  ;;  %v3668_v58 = vld [vmem:[#allocation8 + $0x80] sm:$0xff] }
0x1a14   :  { %v4665_v51 = vpop.eup %4664  ;;  %v4503_v33 = vpack.c.bf16 %v4597_v25, %v4596_v19  ;;  %v3672_v25 = vld [vmem:[#allocation8 + $0xa0] sm:$0xff]  ;;  %v3673_v19 = vld [vmem:[#allocation8 + $0xa8] sm:$0xff] }
0x1a15   :  { %v3250_v16 = vsel %vm88_vm0, %v4665_v51, 0.0  ;;  %v3414_v38 = vpop.permute.xlu1 %3413 }
0x1a16   :  { %3251 = vadd.xlane.f32.xlu0 %v3250_v16  ;;  %v3670_v16 = vld [vmem:[#allocation8 + $0x90] sm:$0xff] }
0x1a19   :  { %v3422_v42 = vpop.permute.xlu1 %3421 }
0x1a2c   :  { %3333 = vrot.lane.b32.xlu0 %v5225_v29, %s4816_s24 }
0x1a30   :  { %3411 = vrot.lane.b32.xlu0 %v5317_v49, %s4799_s27 }
0x1a34   :  { %3419 = vrot.lane.b32.xlu0 %v2997_v44, %s4802_s30  ;;  %v3434_v44 = vsel %vm88_vm0, %v5281_v11, %v3414_v38  ;;  %v3681_v38 = vld [vmem:[#allocation8 + $0xe8] sm:$0xff] }
0x1a35   :  { %v3436_v6 = vsel %vm1617_vm4, %v3434_v44, %v3422_v42 }
0x1a9f   :  { %v3249_v20 = vpop.xlane.xlu0 %3248 }
0x1aa0   :  { %4666 = vrcp.f32 %v3249_v20 }
0x1aa3   :  { %v3252_v21 = vpop.xlane.xlu0 %3251 }
0x1aa4   :  { %4668 = vrcp.f32 %v3252_v21  ;;  %v3671_v21 = vld [vmem:[#allocation8 + $0x98] sm:$0xff] }
0x1aa5   :  { %v4519_v22 = vpack.c.bf16 %v3671_v21, %v3670_v16 }
0x1aa7   :  { %v3334_v59 = vpop.permute.xlu0 %3333 }
0x1aa8   :  { %4363 = vmatpush3.msra.mxu0 %v3334_v59  ;;  %v4523_v59 = vpack.c.bf16 %v3673_v19, %v3672_v25  ;;  %v3811_v25 = vld [vmem:[%s5462_s3] sm:$0xff]  ;;  %v3812_v19 = vld [vmem:[%s5462_s3 + $0x8] sm:$0xff] }
0x1aa9   :  { %4508 = vmatprep.subr.bf16.mxu0 %v4507_v53 }
0x1aaa   :  { %v4667_v31 = vpop.eup %4666 }
0x1aab   :  { %v3254_v34 = vmul.f32 %v4667_v31, %v4663_v56  ;;  %v3412_v13 = vpop.permute.xlu0 %3411  ;;  %v1995_v56 = vld [vmem:[#allocation7 + $0x78] sm:$0xff]  ;;  %v3674_v31 = vld [vmem:[#allocation8 + $0xb0] sm:$0xff] }
0x1aac   :  { %v3433_v23 = vsel %vm88_vm0, %v5279_v1, %v3412_v13  ;;  %v3442_v1 = vrot.slane %v5220_v28, %v1625_v57  ;;  %v3680_v13 = vld [vmem:[#allocation8 + $0xe0] sm:$0xff] }
0x1aad   :  { %4360 = vmatmul.mubr.msk.f32.vlgmr.msra.gmra.mrb[26].mxu1 %vm88_vm0, %v3254_v34 }
0x1aae   :  { %v4669_v29 = vpop.eup %4668  ;;  %4502 = vmatpush3.bf16.msra.mxu1 %v4499_v24  ;;  %v4511_v24 = vpack.c.bf16 %v1995_v56, %v1993_v55 }
0x1aaf   :  { %v3256_v18 = vmul.f32 %v4669_v29, %v4665_v51  ;;  %4504 = vmatprep.subr.bf16.mxu1 %v4503_v33  ;;  %v3420_v40 = vpop.permute.xlu0 %3419  ;;  %v3669_v51 = vld [vmem:[#allocation8 + $0x88] sm:$0xff]  ;;  %v3676_v29 = vld [vmem:[#allocation8 + $0xc0] sm:$0xff] }
0x1ab0   :  { %v3435_v3 = vsel %vm1617_vm4, %v3433_v23, %v3420_v40  ;;  %v4515_v20 = vpack.c.bf16 %v3669_v51, %v3668_v58  ;;  %v4539_v40 = vpack.c.bf16 %v3681_v38, %v3680_v13  ;;  %v3794_v38 = vrot.slane %v5220_v28, %v1977_v2  ;;  %v3977_v2 = vld [vmem:[%s5463_s4] ss:$0 sm:$0xff] }
0x1ab1   :  { %4365 = vmatmul.mubr.msk.f32.vlgmr.msra.gmra.mrb[46].mxu0 %vm88_vm0, %v3256_v18  ;;  %v3677_v18 = vld [vmem:[#allocation8 + $0xc8] sm:$0xff] }
0x1ab2   :  { %4506 = vmatpush3.bf16.msra.mxu1 %v4503_v33  ;;  %4510 = vmatpush3.bf16.msra.mxu0 %v4507_v53  ;;  %v3675_v33 = vld [vmem:[#allocation8 + $0xb8] sm:$0xff] }
0x1ab3   :  { %4512 = vmatprep.subr.bf16.mxu0 %v4511_v24  ;;  %4516 = vmatprep.subr.bf16.mxu1 %v4515_v20  ;;  %v4527_v34 = vpack.c.bf16 %v3675_v33, %v3674_v31  ;;  %v4819_v31 = vmov 0.0|0.0   ;;  %v4548_v33 = vpack.c.bf16 %v3812_v19, %v3811_v25 }
0x1ab6   :  { %4514 = vmatpush3.bf16.msra.mxu0 %v4511_v24 }
0x1ab7   :  { %4547 = vmatprep.subr.bf16.mxu0 %v4819_v31 }
0x1b80   :  { %v3329_v49 = vpop.f32.mrb[26].mxu1 }
0x1b81   :  { %3427 = vrot.lane.b32.xlu0 %v3329_v49, %s4818_s26  ;;  %v4361_v35 = vpop.f32.mrb[27].mxu1  ;;  %v4531_v49 = vpack.c.bf16 %v3677_v18, %v3676_v29 }
0x1b82   :  { %v3678_v35 = vld [vmem:[#allocation8 + $0xd0] sm:$0xff] }
0x1b84   :  { %v3405_v36 = vpop.f32.mrb[46].mxu0 }
0x1b85   :  { %3429 = vrot.lane.b32.xlu1 %v3405_v36, %s4818_s26  ;;  %v4366_v37 = vpop.f32.mrb[47].mxu0  ;;  %v3679_v36 = vld [vmem:[#allocation8 + $0xd8] sm:$0xff] }
0x1b86   :  { %v4535_v37 = vpack.c.bf16 %v3679_v36, %v3678_v35 }
0x1bf3   :  { %v3428_v4 = vpop.permute.xlu0 %3427 }
0x1bf4   :  { %v3437_v43 = vsel %vm1620_vm3, %v3435_v3, %v3428_v4 }
0x1bf5   :  { %4375 = vmatprep.mubr.msk.f32.mxu1 %vm183_vm1, %v3437_v43 }
0x1bf7   :  { %v3430_v7 = vpop.permute.xlu1 %3429 }
0x1bf8   :  { %v3438_v45 = vsel %vm1620_vm3, %v3436_v6, %v3430_v7  ;;  %v3571_v6 = vrot.slane %v5220_v28, %v1755_v8  ;;  %v3682_v8 = vld [vmem:[#allocation8 + $0xf0] sm:$0xff] }
0x1bf9   :  { %4376 = vmatmul.mubr.msk.f32.vlgmr.msra.gmra.mrb[28].mxu1 %vm183_vm1, %v3438_v45 }
0x1bfa   :  { %4518 = vmatpush3.bf16.msra.mxu1 %v4515_v20 }
0x1bfb   :  { %4520 = vmatprep.subr.bf16.mxu1 %v4519_v22 }
0x1bfe   :  { %4522 = vmatpush3.bf16.msra.mxu1 %v4519_v22 }
0x1bff   :  { %4524 = vmatprep.subr.bf16.mxu1 %v4523_v59 }
0x1c02   :  { %4526 = vmatpush3.bf16.msra.mxu1 %v4523_v59  ;;  %v3813_v59 = vld [vmem:[%s5462_s3 + $0x10] sm:$0xff] }
0x1c03   :  { %4528 = vmatprep.subr.bf16.mxu1 %v4527_v34 }
0x1c06   :  { %4530 = vmatpush3.bf16.msra.mxu1 %v4527_v34  ;;  %v3814_v34 = vld [vmem:[%s5462_s3 + $0x18] sm:$0xff] }
0x1c07   :  { %4532 = vmatprep.subr.bf16.mxu1 %v4531_v49  ;;  %v4551_v29 = vpack.c.bf16 %v3814_v34, %v3813_v59 }
0x1c0a   :  { %4534 = vmatpush3.bf16.msra.mxu1 %v4531_v49 }
0x1c0b   :  { %4536 = vmatprep.subr.bf16.mxu1 %v4535_v37 }
0x1c0e   :  { %4538 = vmatpush3.bf16.msra.mxu1 %v4535_v37 }
0x1c0f   :  { %4540 = vmatprep.subr.bf16.mxu1 %v4539_v40 }
0x1c12   :  { %4542 = vmatpush3.bf16.msra.mxu1 %v4539_v40 }
0x1ccc   :  { %v4377_v46 = vpop.f32.mrb[28].mxu1 }
0x1ccd   :  { %v3537_v41 = vadd.f32 %v4377_v46, %v3442_v1  ;;  %v3531_v47 = vpop.f32.mrb[29].mxu1 }
0x1cce   :  { %v3532_v48 = vadd.f32 %v3531_v47, %v3442_v1  ;;  %v3577_v1 = vrot.slane %v5220_v28, %v1761_v9  ;;  %v3583_v9 = vrot.slane %v5220_v28, %v1767_v30 }
0x1ccf   :  { %v3541_v50 = vadd.f32 %v3537_v41, %v5209_v27 }
0x1cd0   :  { %v3540_v54 = vadd.f32 %v3532_v48, %v5207_v26 }
0x1cd1   :  { %v3545_v11 = vsel %vm183_vm1, %v3541_v50, 0.0 }
0x1cd2   :  { %3546 = vadd.xlane.f32.xlu1 %v3545_v11  ;;  %v3542_v39 = vsel %vm183_vm1, %v3540_v54, 0.0  ;;  %v3683_v11 = vld [vmem:[#allocation8 + $0xf8] sm:$0xff] }
0x1cd3   :  { %3543 = vadd.xlane.f32.xlu0 %v3542_v39  ;;  %v4543_v39 = vpack.c.bf16 %v3683_v11, %v3682_v8 }
0x1cd5   :  { %4544 = vmatprep.subr.bf16.mxu1 %v4543_v39 }
0x1cd6   :  { %4546 = vmatpush3.bf16.msra.mxu1 %v4543_v39 }
0x1d5f   :  { %v3547_v60 = vpop.xlane.xlu1 %3546 }
0x1d60   :  { %v3549_v61 = vmul.f32 0.03125, %v3547_v60  ;;  %v3544_v62 = vpop.xlane.xlu0 %3543 }
0x1d61   :  { %v3548_v63 = vmul.f32 0.03125, %v3544_v62 }
0x1d62   :  { %v5398_v0 = vsub.f32 %v3541_v50, %v3549_v61 }
0x1d63   :  { %v3550_v57 = vsub.f32 %v3540_v54, %v3548_v63 }
0x1d64   :  { %v3553_v27 = vmul.f32 %v5398_v0, %v5398_v0 }
0x1d65   :  { %v3552_v32 = vmul.f32 %v3550_v57, %v3550_v57 }
0x1d66   :  { %v3557_v26 = vsel %vm183_vm1, %v3553_v27, 0.0 }
0x1d67   :  { %v3554_v10 = vsel %vm183_vm1, %v3552_v32, 0.0 }
0x1d68   :  { %3555 = vadd.xlane.f32.xlu0 %v3554_v10 }
0x1d6c   :  { %3558 = vadd.xlane.f32.xlu0 %v3557_v26 }
0x1df5   :  { %v3556_v23 = vpop.xlane.xlu0 %3555 }
0x1df6   :  { %v3560_v42 = vmul.f32 0.03125, %v3556_v23 }
0x1df8   :  { %v3562_v3 = vadd.f32 1e-05, %v3560_v42 }
0x1df9   :  { %v3559_v4 = vpop.xlane.xlu0 %3558 }
0x1dfa   :  { %4670 = vrsqrt.f32 %v3562_v3  ;;  %v3561_v43 = vmul.f32 0.03125, %v3559_v4  ;;  %v3800_v3 = vrot.slane %v5220_v28, %v1983_v5 }
0x1dfc   :  { %v3563_v44 = vadd.f32 1e-05, %v3561_v43 }
0x1dfe   :  { %4672 = vrsqrt.f32 %v3563_v44 }
0x1e04   :  { %v4671_v7 = vpop.eup %4670 }
0x1e05   :  { %v3566_v45 = vmul.f32 %v4671_v7, %v3550_v57 }
0x1e07   :  { %v3572_v46 = vmul.f32 %v3571_v6, %v3566_v45 }
0x1e08   :  { %v4673_v41 = vpop.eup %4672 }
0x1e09   :  { %v3567_v47 = vmul.f32 %v4673_v41, %v5398_v0  ;;  %v3578_v48 = vadd.f32 %v3577_v1, %v3572_v46 }
0x1e0b   :  { %v3573_v50 = vmul.f32 %v3571_v6, %v3567_v47  ;;  %4386 = vmatprep.mubr.msk.f32.mxu0 %vm183_vm1, %v3578_v48 }
0x1e0d   :  { %v3579_v54 = vadd.f32 %v3577_v1, %v3573_v50 }
0x1e0f   :  { %4387 = vmatmul.mubr.msk.f32.vlgmr.msra.gmra.mrb[48].mxu0 %vm183_vm1, %v3579_v54 }
0x1e10   :  { %4432 = vmatprep.mubr.msk.f32.mxu0 %vm4805_vm2, %v4804_v15  ;;  %v3687_v15 = vrot.slane %v5220_v28, %v1870_v14  ;;  %4549 = vmatpush3.bf16.msra.mxu0 %v4548_v33 }
0x1e11   :  { %4550 = vmatprep.subr.bf16.mxu0 %v4819_v31 }
0x1e14   :  { %4552 = vmatpush3.bf16.msra.mxu0 %v4551_v29 }
0x1ee2   :  { %v4388_v60 = vpop.f32.mrb[48].mxu0 }
0x1ee3   :  { %v3662_v61 = vadd.f32 %v4388_v60, %v3583_v9  ;;  %v3656_v62 = vpop.f32.mrb[49].mxu0 }
0x1ee4   :  { %v3657_v63 = vadd.f32 %v3656_v62, %v3583_v9 }
0x1ee5   :  { %v3666_v57 = vmax.f32 %v3662_v61, 0.0 }
0x1ee6   :  { %v3665_v0 = vmax.f32 %v3657_v63, 0.0 }
0x1ee8   :  { %4421 = vmatprep.mubr.f32.mxu1 %v3665_v0 }
0x1ee9   :  { %4422 = vmatmul.mubr.f32.vlgmr.msra.gmra.mrb[30].mxu1 %v3666_v57 }
0x1fbc   :  { %v4423_v32 = vpop.f32.mrb[30].mxu1 }
0x1fbd   :  { %v3760_v10 = vadd.f32 %v4423_v32, %v3687_v15  ;;  %v3754_v27 = vpop.f32.mrb[31].mxu1 }
0x1fbe   :  { %v3755_v26 = vadd.f32 %v3754_v27, %v3687_v15 }
0x1fbf   :  { %v3764_v12 = vadd.f32 %v3760_v10, %v3579_v54 }
0x1fc0   :  { %v3763_v52 = vadd.f32 %v3755_v26, %v3578_v48 }
0x1fc1   :  { %v3768_v30 = vsel %vm183_vm1, %v3764_v12, 0.0 }
0x1fc2   :  { %3769 = vadd.xlane.f32.xlu0 %v3768_v30  ;;  %v3765_v53 = vsel %vm183_vm1, %v3763_v52, 0.0 }
0x1fc3   :  { %3766 = vadd.xlane.f32.xlu1 %v3765_v53 }
0x204f   :  { %v3770_v55 = vpop.xlane.xlu0 %3769 }
0x2050   :  { %v3772_v56 = vmul.f32 0.03125, %v3770_v55  ;;  %v3767_v24 = vpop.xlane.xlu1 %3766 }
0x2051   :  { %v3771_v58 = vmul.f32 0.03125, %v3767_v24 }
0x2052   :  { %v3774_v51 = vsub.f32 %v3764_v12, %v3772_v56 }
0x2053   :  { %v3773_v16 = vsub.f32 %v3763_v52, %v3771_v58 }
0x2054   :  { %v3776_v20 = vmul.f32 %v3774_v51, %v3774_v51 }
0x2055   :  { %v3775_v14 = vmul.f32 %v3773_v16, %v3773_v16 }
0x2056   :  { %v3780_v21 = vsel %vm183_vm1, %v3776_v20, 0.0 }
0x2057   :  { %3781 = vadd.xlane.f32.xlu0 %v3780_v21  ;;  %v3777_v22 = vsel %vm183_vm1, %v3775_v14, 0.0 }
0x2058   :  { %3778 = vadd.xlane.f32.xlu1 %v3777_v22 }
0x20e4   :  { %v3782_v18 = vpop.xlane.xlu0 %3781 }
0x20e5   :  { %v3784_v49 = vmul.f32 0.03125, %v3782_v18  ;;  %v3779_v35 = vpop.xlane.xlu1 %3778 }
0x20e6   :  { %v3783_v36 = vmul.f32 0.03125, %v3779_v35 }
0x20e7   :  { %v3786_v37 = vadd.f32 1e-05, %v3784_v49 }
0x20e8   :  { %v3785_v13 = vadd.f32 1e-05, %v3783_v36 }
0x20e9   :  { %4674 = vrsqrt.f32 %v3786_v37 }
0x20ea   :  { %4676 = vrsqrt.f32 %v3785_v13 }
0x20f3   :  { %v4675_v40 = vpop.eup %4674 }
0x20f4   :  { %v4677_v23 = vpop.eup %4676  ;;  %v3790_v42 = vmul.f32 %v4675_v40, %v3774_v51 }
0x20f5   :  { %v3789_v4 = vmul.f32 %v4677_v23, %v3773_v16 }
0x20f6   :  { %v3796_v43 = vmul.f32 %v3794_v38, %v3790_v42 }
0x20f7   :  { %v3795_v44 = vmul.f32 %v3794_v38, %v3789_v4 }
0x20f8   :  { %v3802_v6 = vadd.f32 %v3800_v3, %v3796_v43 }
0x20f9   :  { %v3801_v7 = vadd.f32 %v3800_v3, %v3795_v44 }
0x20fa   :  { %v3807_v45 = vrot.slane %v3802_v6, 6 }
0x20fb   :  { %v3804_v1 = vrot.slane %v3801_v7, 7 }
0x20fd   :  { %v3810_v46 = vsel %vm3809_vm5, %v3804_v1, %v3807_v45 }
0x20fe   :  { %4433 = vmatmul.mubr.msk.f32.vlgmr.msra.gmra.mrb[50].mxu0 %vm183_vm1, %v3810_v46 }
0x21d1   :  { %v3891_v17 = vpop.f32.mrb[50].mxu0 }
0x21d2   :  { %v3892_v5 = vadd.f32 %v3977_v2, %v3891_v17  ;;  %v4434_v28 = vpop.f32.mrb[51].mxu0 }
0x21d4   :  { %3896 = vst.msk [vmem:[#allocation10] sm:$0x3] %vm3895_vm6, %v3892_v5 }
0x21d5   :  { %4777 = shalt.err (!%p4774_p8)
}
0x21d6   :  { %s4778_s16 = scalar_lea.hbm %s5467_s8, 32 }
0x21d7   :  { %p4779_p9 = scmp.ne.s32.totalorder %s5467_s8, %s4778_s16  ;;  %p4782_p10 = scmp.lt.u32.totalorder %s4778_s16, %s5467_s8 }
0x21d9   :  { %p4784_p11 = pnand %p4782_p10, %p4779_p9 }
0x21db   :  { %4787 = shalt.err (!%p4784_p11)
}
0x21dc   :  { %3906 = dma.vmem_to_hbm [thread:$0]  %s3904_s13, 32, %s5467_s8, [#allocation4]  }
0x21dd   :  { %4794 = dma.done.wait [#allocation4], 32  }
0x21de   :  { %4795 = vsyncadd [#allocation4], 4294967264 }
0x21df   :  { %3910 = vsyncpa [#allocation3], 1 }
0x21e0   :  { %3911 = vsyncpa [#allocation6], 1 }
0x21e1   :  { %3912 = vsyncpa [#allocation9], 1 }
0x21e2   :  { %3913 = vsyncpa [#allocation4], 1 }

</bundles_post_ra>
